<compile_context>
chip_gen: v5e
topology: v5e:2x2
jax: 0.10.0
libtpu: 0.0.40
codegen_flags: <defaults>
</compile_context>

<pallas_src>
import functools

import jax
import jax.numpy as jnp
from jax.experimental import pallas as pl
from jax.experimental.pallas import tpu as pltpu

_LANE = 128
_SUB = 8


def _round_up(x, m):
    return (x + m - 1) // m * m


def _pick_tm(m):
    """Row tile: big when M is big (pipelining + megacore), whole-M otherwise."""
    mp = _round_up(m, _SUB)
    if mp >= 2 * 512:
        return 512
    if mp >= 2 * 128:
        return 128
    return mp


# ----------------------------- Pallas kernels -----------------------------

def _mm_bn_kernel(x_ref, w_ref, s_ref, b_ref, o_ref, *, relu):
    # conv-as-matmul (bf16 operands, f32 accumulate) + folded BN (+ ReLU)
    acc = jnp.dot(x_ref[...], w_ref[...], preferred_element_type=jnp.float32)
    y = acc * s_ref[...] + b_ref[...]
    if relu:
        y = jnp.maximum(y, 0.0)
    o_ref[...] = y.astype(o_ref.dtype)


def _mm_bn_fused_res_kernel(x_ref, w_ref, s_ref, b_ref,
                            r_ref, wd_ref, sd_ref, bd_ref, o_ref, *, relu):
    # conv3+bn3 and the downsample conv+bn fused in one kernel, then residual
    # add (+ ReLU).  Both dots share the same (tm, Np) output tile.
    main = jnp.dot(x_ref[...], w_ref[...], preferred_element_type=jnp.float32)
    main = main * s_ref[...] + b_ref[...]
    ident = jnp.dot(r_ref[...], wd_ref[...], preferred_element_type=jnp.float32)
    ident = ident * sd_ref[...] + bd_ref[...]
    y = main + ident
    if relu:
        y = jnp.maximum(y, 0.0)
    o_ref[...] = y.astype(o_ref.dtype)


def _maxpool_kernel(p_ref, o_ref):
    # p_ref: (taps=9, tm, Cp) lane-dense; elementwise max over the tap axis.
    o_ref[...] = jnp.max(p_ref[...], axis=0)


# ----------------------------- kernel wrappers -----------------------------

def matmul_bn(x_mat, w_mat, scale, bias, *, relu, out_dtype=jnp.bfloat16,
              residual=None):
    """y = [relu]((x @ w) * scale + bias [+ (r @ wd) * sd + bd]), rows tiled."""
    M, K = x_mat.shape
    N = w_mat.shape[1]
    Kp = _round_up(K, _LANE)
    Np = _round_up(N, _LANE)
    tm = _pick_tm(M)
    Mp = _round_up(M, tm)

    xp = jnp.pad(x_mat.astype(jnp.bfloat16), ((0, Mp - M), (0, Kp - K)))
    wp = jnp.pad(w_mat.astype(jnp.bfloat16), ((0, Kp - K), (0, Np - N)))
    sp = jnp.pad(scale.astype(jnp.float32), (0, Np - N)).reshape(1, Np)
    bp = jnp.pad(bias.astype(jnp.float32), (0, Np - N)).reshape(1, Np)

    in_specs = [
        pl.BlockSpec((tm, Kp), lambda i: (i, 0)),
        pl.BlockSpec((Kp, Np), lambda i: (0, 0)),
        pl.BlockSpec((1, Np), lambda i: (0, 0)),
        pl.BlockSpec((1, Np), lambda i: (0, 0)),
    ]
    args = [xp, wp, sp, bp]

    if residual is not None:
        r_mat, wd_mat, sd, bd = residual
        Kd = r_mat.shape[1]
        Kdp = _round_up(Kd, _LANE)
        rp = jnp.pad(r_mat.astype(jnp.bfloat16), ((0, Mp - M), (0, Kdp - Kd)))
        wdp = jnp.pad(wd_mat.astype(jnp.bfloat16), ((0, Kdp - Kd), (0, Np - N)))
        sdp = jnp.pad(sd.astype(jnp.float32), (0, Np - N)).reshape(1, Np)
        bdp = jnp.pad(bd.astype(jnp.float32), (0, Np - N)).reshape(1, Np)
        in_specs += [
            pl.BlockSpec((tm, Kdp), lambda i: (i, 0)),
            pl.BlockSpec((Kdp, Np), lambda i: (0, 0)),
            pl.BlockSpec((1, Np), lambda i: (0, 0)),
            pl.BlockSpec((1, Np), lambda i: (0, 0)),
        ]
        args += [rp, wdp, sdp, bdp]
        kernel = functools.partial(_mm_bn_fused_res_kernel, relu=relu)
    else:
        kernel = functools.partial(_mm_bn_kernel, relu=relu)

    out = pl.pallas_call(
        kernel,
        out_shape=jax.ShapeDtypeStruct((Mp, Np), out_dtype),
        grid=(Mp // tm,),
        in_specs=in_specs,
        out_specs=pl.BlockSpec((tm, Np), lambda i: (i, 0)),
        compiler_params=pltpu.CompilerParams(dimension_semantics=("parallel",)),
    )(*args)
    return out[:M, :N]


def _fold_bn(bn, eps=1e-5):
    gamma, beta, mean, var = bn
    s = gamma / jnp.sqrt(var + eps)
    return s, beta - mean * s


def _im2col_nhwc(x, kh, kw, stride, pad):
    """NHWC -> (N*Ho*Wo, kh*kw*C); column ordering (i, j, c) matching
    weight.transpose(2, 3, 1, 0).reshape(kh*kw*Cin, Cout)."""
    N, H, W, C = x.shape
    xp = jnp.pad(x, ((0, 0), (pad, pad), (pad, pad), (0, 0)))
    Ho = (H + 2 * pad - kh) // stride + 1
    Wo = (W + 2 * pad - kw) // stride + 1
    cols = [xp[:, i:i + stride * Ho:stride, j:j + stride * Wo:stride, :]
            for i in range(kh) for j in range(kw)]
    p = jnp.concatenate(cols, axis=-1)            # (N, Ho, Wo, kh*kw*C)
    return p.reshape(N * Ho * Wo, kh * kw * C), Ho, Wo


def conv_bn_im2col(x_nhwc, w, bn, *, stride, pad, relu,
                   out_dtype=jnp.bfloat16):
    """Conv2d (no bias, kh*kw>1) + BatchNorm(eval) [+ ReLU], NHWC in/out."""
    Cout, Cin, kh, kw = w.shape
    N = x_nhwc.shape[0]
    x_mat, Ho, Wo = _im2col_nhwc(x_nhwc, kh, kw, stride, pad)
    w_mat = w.transpose(2, 3, 1, 0).reshape(kh * kw * Cin, Cout)
    s, b = _fold_bn(bn)
    y = matmul_bn(x_mat, w_mat, s, b, relu=relu, out_dtype=out_dtype)
    return y.reshape(N, Ho, Wo, Cout)


def conv1x1_bn(x_nhwc, w, bn, *, relu, out_dtype=jnp.bfloat16):
    """1x1 Conv2d + BatchNorm(eval) [+ ReLU] without im2col, NHWC in/out."""
    N, H, W, Cin = x_nhwc.shape
    Cout = w.shape[0]
    s, b = _fold_bn(bn)
    y = matmul_bn(x_nhwc.reshape(N * H * W, Cin), w.reshape(Cout, Cin).T,
                  s, b, relu=relu, out_dtype=out_dtype)
    return y.reshape(N, H, W, Cout)


def conv3_downsample_residual(out2_nhwc, y_nhwc, p):
    """Fused: conv3+bn3, downsample conv+bn on y, residual add, ReLU."""
    N, H, W, C = out2_nhwc.shape
    Cd = y_nhwc.shape[-1]
    Cout = p["conv3_w"].shape[0]
    s3, b3 = _fold_bn(p["bn3"])
    sd, bd = _fold_bn(p["ds_bn"])
    y = matmul_bn(
        out2_nhwc.reshape(N * H * W, C),
        p["conv3_w"].reshape(Cout, C).T, s3, b3,
        relu=True, out_dtype=jnp.float32,
        residual=(y_nhwc.reshape(N * H * W, Cd),
                  p["ds_w"].reshape(Cout, Cd).T, sd, bd),
    )
    return y.reshape(N, H, W, Cout)


def maxpool_3x3_s2_p1(x_nhwc):
    """PyTorch MaxPool2d(kernel_size=3, stride=2, padding=1), NHWC in/out."""
    N, H, W, C = x_nhwc.shape
    kh = kw = 3
    stride, pad = 2, 1
    neg = float(jnp.finfo(x_nhwc.dtype).min)
    xp = jnp.pad(x_nhwc, ((0, 0), (pad, pad), (pad, pad), (0, 0)),
                 constant_values=neg)
    Ho = (H + 2 * pad - kh) // stride + 1
    Wo = (W + 2 * pad - kw) // stride + 1
    taps = jnp.stack([xp[:, i:i + stride * Ho:stride,
                         j:j + stride * Wo:stride, :]
                      for i in range(kh) for j in range(kw)], axis=0)
    M = N * Ho * Wo
    taps = taps.reshape(kh * kw, M, C)

    Cp = _round_up(C, _LANE)
    tm = _pick_tm(M)
    Mp = _round_up(M, tm)
    tp = jnp.pad(taps, ((0, 0), (0, Mp - M), (0, Cp - C)),
                 constant_values=neg)

    out = pl.pallas_call(
        _maxpool_kernel,
        out_shape=jax.ShapeDtypeStruct((Mp, Cp), x_nhwc.dtype),
        grid=(Mp // tm,),
        in_specs=[pl.BlockSpec((kh * kw, tm, Cp), lambda i: (0, i, 0))],
        out_specs=pl.BlockSpec((tm, Cp), lambda i: (i, 0)),
        compiler_params=pltpu.CompilerParams(dimension_semantics=("parallel",)),
    )(tp)
    return out[:M, :C].reshape(N, Ho, Wo, C)


# ----------------------------- Backbone forward -----------------------------

def backbone_forward(x_nchw, params):
    # single layout conversion at the entry: NCHW f32 -> NHWC bf16
    x = x_nchw.transpose(0, 2, 3, 1).astype(jnp.bfloat16)

    # pre_features: conv1 -> bn1 -> relu -> maxpool
    y = conv_bn_im2col(x, params["conv1_w"], params["bn1"],
                       stride=2, pad=3, relu=True)
    y = maxpool_3x3_s2_p1(y)

    # features: layer1[0] Bottleneck (64 -> 64 -> 64 -> 256, with downsample)
    p = params["block"]
    out = conv1x1_bn(y, p["conv1_w"], p["bn1"], relu=True)
    out = conv_bn_im2col(out, p["conv2_w"], p["bn2"],
                         stride=1, pad=1, relu=True)
    out = conv3_downsample_residual(out, y, p)        # f32, fused ds+residual

    # Flatten with PyTorch's NCHW ordering: (N, C*H*W)
    return out.transpose(0, 3, 1, 2).reshape(out.shape[0], -1)


# ----------------------------- parameter init -----------------------------

def init_params(key):
    ks = jax.random.split(key, 10)

    def conv(k, shape):
        return 0.05 * jax.random.normal(k, shape, jnp.float32)

    def bn(k, c):
        k1, k2, k3, k4 = jax.random.split(k, 4)
        return (1.0 + 0.1 * jax.random.normal(k1, (c,), jnp.float32),   # gamma
                0.1 * jax.random.normal(k2, (c,), jnp.float32),         # beta
                0.05 * jax.random.normal(k3, (c,), jnp.float32),        # mean
                0.5 + jax.random.uniform(k4, (c,), jnp.float32))        # var

    return {
        "conv1_w": conv(ks[0], (64, 3, 7, 7)),
        "bn1": bn(ks[1], 64),
        "block": {
            "conv1_w": conv(ks[2], (64, 64, 1, 1)), "bn1": bn(ks[3], 64),
            "conv2_w": conv(ks[4], (64, 64, 3, 3)), "bn2": bn(ks[5], 64),
            "conv3_w": conv(ks[6], (256, 64, 1, 1)), "bn3": bn(ks[7], 256),
            "ds_w": conv(ks[8], (256, 64, 1, 1)), "ds_bn": bn(ks[9], 256),
        },
    }


if __name__ == "__main__":
    key = jax.random.PRNGKey(0)
    k_x, k_p = jax.random.split(key)
    # small NCHW input consistent with resnet50's 3-channel conv1
    x = jax.random.normal(k_x, (2, 3, 16, 16), jnp.float32)
    params = init_params(k_p)

    fwd = jax.jit(backbone_forward)
    out = fwd(x, params)
    jax.block_until_ready(out)

    # conv1(s2): 16->8, maxpool(s2): 8->4, bottleneck keeps 4x4 with 256 ch
    assert out.shape == (2, 256 * 4 * 4), out.shape
    assert bool(jnp.all(jnp.isfinite(out)))
    print("KERNEL_OK")
</pallas_src>

<mosaic_0001>
module attributes {stable_mosaic.version = 11 : i64} {
  func.func @_mm_bn_kernel(%arg0: i32, %arg1: memref<128x256xbf16, #tpu.memory_space<vmem>>, %arg2: memref<256x128xbf16, #tpu.memory_space<vmem>>, %arg3: memref<1x128xf32, #tpu.memory_space<vmem>>, %arg4: memref<1x128xf32, #tpu.memory_space<vmem>>, %arg5: memref<128x128xbf16, #tpu.memory_space<vmem>>) attributes {dimension_semantics = [#tpu.dimension_semantics<parallel>], iteration_bounds = array<i64: 1>, scalar_prefetch = 0 : i64, scratch_operands = 0 : i64, tpu.core_type = #tpu.core_type<tc>, window_params = [{transform_indices = @transform_0, window_bounds = array<i64: 128, 256>}, {pipeline_mode = #tpu.pipeline_mode<synchronous>, transform_indices = @transform_1, window_bounds = array<i64: 256, 128>}, {pipeline_mode = #tpu.pipeline_mode<synchronous>, transform_indices = @transform_2, window_bounds = array<i64: 1, 128>}, {pipeline_mode = #tpu.pipeline_mode<synchronous>, transform_indices = @transform_3, window_bounds = array<i64: 1, 128>}, {transform_indices = @transform_4, window_bounds = array<i64: 128, 128>}]} {
    %c0 = arith.constant 0 : index
    %c0_0 = arith.constant 0 : index
    %0 = vector.load %arg1[%c0, %c0_0] : memref<128x256xbf16, #tpu.memory_space<vmem>>, vector<128x256xbf16>
    %c0_1 = arith.constant 0 : index
    %c0_2 = arith.constant 0 : index
    %1 = vector.load %arg2[%c0_1, %c0_2] : memref<256x128xbf16, #tpu.memory_space<vmem>>, vector<256x128xbf16>
    %cst = arith.constant dense<0.000000e+00> : vector<128x128xf32>
    %2 = tpu.matmul %0, %1, %cst {dimension_numbers = #tpu.dot_dimension_numbers<[1], [0], [0], [1], [0, 0, 1, 1], [], []>} : vector<128x256xbf16>, vector<256x128xbf16>, vector<128x128xf32> -> vector<128x128xf32>
    %c0_3 = arith.constant 0 : index
    %c0_4 = arith.constant 0 : index
    %3 = vector.load %arg3[%c0_3, %c0_4] : memref<1x128xf32, #tpu.memory_space<vmem>>, vector<1x128xf32>
    %4 = vector.broadcast %3 : vector<1x128xf32> to vector<128x128xf32>
    %5 = arith.mulf %2, %4 : vector<128x128xf32>
    %c0_5 = arith.constant 0 : index
    %c0_6 = arith.constant 0 : index
    %6 = vector.load %arg4[%c0_5, %c0_6] : memref<1x128xf32, #tpu.memory_space<vmem>>, vector<1x128xf32>
    %7 = vector.broadcast %6 : vector<1x128xf32> to vector<128x128xf32>
    %8 = arith.addf %5, %7 : vector<128x128xf32>
    %cst_7 = arith.constant 0.000000e+00 : f32
    %9 = vector.broadcast %cst_7 : f32 to vector<128x128xf32>
    %10 = arith.maximumf %8, %9 : vector<128x128xf32>
    %11 = arith.truncf %10 : vector<128x128xf32> to vector<128x128xbf16>
    %c0_8 = arith.constant 0 : index
    %c0_9 = arith.constant 0 : index
    %12 = vector.load %arg5[%c0_8, %c0_9] : memref<128x128xbf16, #tpu.memory_space<vmem>>, vector<128x128xbf16>
    tpu.vector_store %arg5[%c0_8, %c0_9], %11 {strides = array<i32>} : memref<128x128xbf16, #tpu.memory_space<vmem>>, vector<128x128xbf16>,
    return
  }
  func.func @transform_0(%arg0: i32) -> (i32, i32) {
    %c0_i32 = arith.constant 0 : i32
    %c0_i32_0 = arith.constant 0 : i32
    return %arg0, %c0_i32 : i32, i32
  }
  func.func @transform_1(%arg0: i32) -> (i32, i32) {
    %c0_i32 = arith.constant 0 : i32
    %c0_i32_0 = arith.constant 0 : i32
    %c0_i32_1 = arith.constant 0 : i32
    return %c0_i32, %c0_i32_0 : i32, i32
  }
  func.func @transform_2(%arg0: i32) -> (i32, i32) {
    %c0_i32 = arith.constant 0 : i32
    %c0_i32_0 = arith.constant 0 : i32
    %c0_i32_1 = arith.constant 0 : i32
    return %c0_i32, %c0_i32_0 : i32, i32
  }
  func.func @transform_3(%arg0: i32) -> (i32, i32) {
    %c0_i32 = arith.constant 0 : i32
    %c0_i32_0 = arith.constant 0 : i32
    %c0_i32_1 = arith.constant 0 : i32
    return %c0_i32, %c0_i32_0 : i32, i32
  }
  func.func @transform_4(%arg0: i32) -> (i32, i32) {
    %c0_i32 = arith.constant 0 : i32
    %c0_i32_0 = arith.constant 0 : i32
    return %arg0, %c0_i32 : i32, i32
  }
}

module attributes {stable_mosaic.version = 11 : i64} {
  func.func @_maxpool_kernel(%arg0: i32, %arg1: memref<9x32x128xbf16, #tpu.memory_space<vmem>>, %arg2: memref<32x128xbf16, #tpu.memory_space<vmem>>) attributes {dimension_semantics = [#tpu.dimension_semantics<parallel>], iteration_bounds = array<i64: 1>, scalar_prefetch = 0 : i64, scratch_operands = 0 : i64, tpu.core_type = #tpu.core_type<tc>, window_params = [{transform_indices = @transform_0, window_bounds = array<i64: 9, 32, 128>}, {transform_indices = @transform_1, window_bounds = array<i64: 32, 128>}]} {
    %c0 = arith.constant 0 : index
    %c0_0 = arith.constant 0 : index
    %c0_1 = arith.constant 0 : index
    %0 = vector.load %arg1[%c0, %c0_0, %c0_1] : memref<9x32x128xbf16, #tpu.memory_space<vmem>>, vector<9x32x128xbf16>
    %cst = arith.constant dense<0xFF80> : vector<32x128xbf16>
    %1 = vector.multi_reduction <maximumf>, %0, %cst [0] : vector<9x32x128xbf16> to vector<32x128xbf16>
    %c0_2 = arith.constant 0 : index
    %c0_3 = arith.constant 0 : index
    %2 = vector.load %arg2[%c0_2, %c0_3] : memref<32x128xbf16, #tpu.memory_space<vmem>>, vector<32x128xbf16>
    tpu.vector_store %arg2[%c0_2, %c0_3], %1 {strides = array<i32>} : memref<32x128xbf16, #tpu.memory_space<vmem>>, vector<32x128xbf16>,
    return
  }
  func.func @transform_0(%arg0: i32) -> (i32, i32, i32) {
    %c0_i32 = arith.constant 0 : i32
    %c0_i32_0 = arith.constant 0 : i32
    %c0_i32_1 = arith.constant 0 : i32
    return %c0_i32, %arg0, %c0_i32_0 : i32, i32, i32
  }
  func.func @transform_1(%arg0: i32) -> (i32, i32) {
    %c0_i32 = arith.constant 0 : i32
    %c0_i32_0 = arith.constant 0 : i32
    return %arg0, %c0_i32 : i32, i32
  }
}

module attributes {stable_mosaic.version = 11 : i64} {
  func.func @_mm_bn_kernel(%arg0: i32, %arg1: memref<32x128xbf16, #tpu.memory_space<vmem>>, %arg2: memref<128x128xbf16, #tpu.memory_space<vmem>>, %arg3: memref<1x128xf32, #tpu.memory_space<vmem>>, %arg4: memref<1x128xf32, #tpu.memory_space<vmem>>, %arg5: memref<32x128xbf16, #tpu.memory_space<vmem>>) attributes {dimension_semantics = [#tpu.dimension_semantics<parallel>], iteration_bounds = array<i64: 1>, scalar_prefetch = 0 : i64, scratch_operands = 0 : i64, tpu.core_type = #tpu.core_type<tc>, window_params = [{transform_indices = @transform_0, window_bounds = array<i64: 32, 128>}, {pipeline_mode = #tpu.pipeline_mode<synchronous>, transform_indices = @transform_1, window_bounds = array<i64: 128, 128>}, {pipeline_mode = #tpu.pipeline_mode<synchronous>, transform_indices = @transform_2, window_bounds = array<i64: 1, 128>}, {pipeline_mode = #tpu.pipeline_mode<synchronous>, transform_indices = @transform_3, window_bounds = array<i64: 1, 128>}, {transform_indices = @transform_4, window_bounds = array<i64: 32, 128>}]} {
    %c0 = arith.constant 0 : index
    %c0_0 = arith.constant 0 : index
    %0 = vector.load %arg1[%c0, %c0_0] : memref<32x128xbf16, #tpu.memory_space<vmem>>, vector<32x128xbf16>
    %c0_1 = arith.constant 0 : index
    %c0_2 = arith.constant 0 : index
    %1 = vector.load %arg2[%c0_1, %c0_2] : memref<128x128xbf16, #tpu.memory_space<vmem>>, vector<128x128xbf16>
    %cst = arith.constant dense<0.000000e+00> : vector<32x128xf32>
    %2 = tpu.matmul %0, %1, %cst {dimension_numbers = #tpu.dot_dimension_numbers<[1], [0], [0], [1], [0, 0, 1, 1], [], []>} : vector<32x128xbf16>, vector<128x128xbf16>, vector<32x128xf32> -> vector<32x128xf32>
    %c0_3 = arith.constant 0 : index
    %c0_4 = arith.constant 0 : index
    %3 = vector.load %arg3[%c0_3, %c0_4] : memref<1x128xf32, #tpu.memory_space<vmem>>, vector<1x128xf32>
    %4 = vector.broadcast %3 : vector<1x128xf32> to vector<32x128xf32>
    %5 = arith.mulf %2, %4 : vector<32x128xf32>
    %c0_5 = arith.constant 0 : index
    %c0_6 = arith.constant 0 : index
    %6 = vector.load %arg4[%c0_5, %c0_6] : memref<1x128xf32, #tpu.memory_space<vmem>>, vector<1x128xf32>
    %7 = vector.broadcast %6 : vector<1x128xf32> to vector<32x128xf32>
    %8 = arith.addf %5, %7 : vector<32x128xf32>
    %cst_7 = arith.constant 0.000000e+00 : f32
    %9 = vector.broadcast %cst_7 : f32 to vector<32x128xf32>
    %10 = arith.maximumf %8, %9 : vector<32x128xf32>
    %11 = arith.truncf %10 : vector<32x128xf32> to vector<32x128xbf16>
    %c0_8 = arith.constant 0 : index
    %c0_9 = arith.constant 0 : index
    %12 = vector.load %arg5[%c0_8, %c0_9] : memref<32x128xbf16, #tpu.memory_space<vmem>>, vector<32x128xbf16>
    tpu.vector_store %arg5[%c0_8, %c0_9], %11 {strides = array<i32>} : memref<32x128xbf16, #tpu.memory_space<vmem>>, vector<32x128xbf16>,
    return
  }
  func.func @transform_0(%arg0: i32) -> (i32, i32) {
    %c0_i32 = arith.constant 0 : i32
    %c0_i32_0 = arith.constant 0 : i32
    return %arg0, %c0_i32 : i32, i32
  }
  func.func @transform_1(%arg0: i32) -> (i32, i32) {
    %c0_i32 = arith.constant 0 : i32
    %c0_i32_0 = arith.constant 0 : i32
    %c0_i32_1 = arith.constant 0 : i32
    return %c0_i32, %c0_i32_0 : i32, i32
  }
  func.func @transform_2(%arg0: i32) -> (i32, i32) {
    %c0_i32 = arith.constant 0 : i32
    %c0_i32_0 = arith.constant 0 : i32
    %c0_i32_1 = arith.constant 0 : i32
    return %c0_i32, %c0_i32_0 : i32, i32
  }
  func.func @transform_3(%arg0: i32) -> (i32, i32) {
    %c0_i32 = arith.constant 0 : i32
    %c0_i32_0 = arith.constant 0 : i32
    %c0_i32_1 = arith.constant 0 : i32
    return %c0_i32, %c0_i32_0 : i32, i32
  }
  func.func @transform_4(%arg0: i32) -> (i32, i32) {
    %c0_i32 = arith.constant 0 : i32
    %c0_i32_0 = arith.constant 0 : i32
    return %arg0, %c0_i32 : i32, i32
  }
}

module attributes {stable_mosaic.version = 11 : i64} {
  func.func @_mm_bn_fused_res_kernel(%arg0: i32, %arg1: memref<32x128xbf16, #tpu.memory_space<vmem>>, %arg2: memref<128x256xbf16, #tpu.memory_space<vmem>>, %arg3: memref<1x256xf32, #tpu.memory_space<vmem>>, %arg4: memref<1x256xf32, #tpu.memory_space<vmem>>, %arg5: memref<32x128xbf16, #tpu.memory_space<vmem>>, %arg6: memref<128x256xbf16, #tpu.memory_space<vmem>>, %arg7: memref<1x256xf32, #tpu.memory_space<vmem>>, %arg8: memref<1x256xf32, #tpu.memory_space<vmem>>, %arg9: memref<32x256xf32, #tpu.memory_space<vmem>>) attributes {dimension_semantics = [#tpu.dimension_semantics<parallel>], iteration_bounds = array<i64: 1>, scalar_prefetch = 0 : i64, scratch_operands = 0 : i64, tpu.core_type = #tpu.core_type<tc>, window_params = [{transform_indices = @transform_0, window_bounds = array<i64: 32, 128>}, {pipeline_mode = #tpu.pipeline_mode<synchronous>, transform_indices = @transform_1, window_bounds = array<i64: 128, 256>}, {pipeline_mode = #tpu.pipeline_mode<synchronous>, transform_indices = @transform_2, window_bounds = array<i64: 1, 256>}, {pipeline_mode = #tpu.pipeline_mode<synchronous>, transform_indices = @transform_3, window_bounds = array<i64: 1, 256>}, {transform_indices = @transform_4, window_bounds = array<i64: 32, 128>}, {pipeline_mode = #tpu.pipeline_mode<synchronous>, transform_indices = @transform_5, window_bounds = array<i64: 128, 256>}, {pipeline_mode = #tpu.pipeline_mode<synchronous>, transform_indices = @transform_6, window_bounds = array<i64: 1, 256>}, {pipeline_mode = #tpu.pipeline_mode<synchronous>, transform_indices = @transform_7, window_bounds = array<i64: 1, 256>}, {transform_indices = @transform_8, window_bounds = array<i64: 32, 256>}]} {
    %c0 = arith.constant 0 : index
    %c0_0 = arith.constant 0 : index
    %0 = vector.load %arg1[%c0, %c0_0] : memref<32x128xbf16, #tpu.memory_space<vmem>>, vector<32x128xbf16>
    %c0_1 = arith.constant 0 : index
    %c0_2 = arith.constant 0 : index
    %1 = vector.load %arg2[%c0_1, %c0_2] : memref<128x256xbf16, #tpu.memory_space<vmem>>, vector<128x256xbf16>
    %cst = arith.constant dense<0.000000e+00> : vector<32x256xf32>
    %2 = tpu.matmul %0, %1, %cst {dimension_numbers = #tpu.dot_dimension_numbers<[1], [0], [0], [1], [0, 0, 1, 1], [], []>} : vector<32x128xbf16>, vector<128x256xbf16>, vector<32x256xf32> -> vector<32x256xf32>
    %c0_3 = arith.constant 0 : index
    %c0_4 = arith.constant 0 : index
    %3 = vector.load %arg3[%c0_3, %c0_4] : memref<1x256xf32, #tpu.memory_space<vmem>>, vector<1x256xf32>
    %4 = vector.broadcast %3 : vector<1x256xf32> to vector<32x256xf32>
    %5 = arith.mulf %2, %4 : vector<32x256xf32>
    %c0_5 = arith.constant 0 : index
    %c0_6 = arith.constant 0 : index
    %6 = vector.load %arg4[%c0_5, %c0_6] : memref<1x256xf32, #tpu.memory_space<vmem>>, vector<1x256xf32>
    %7 = vector.broadcast %6 : vector<1x256xf32> to vector<32x256xf32>
    %8 = arith.addf %5, %7 : vector<32x256xf32>
    %c0_7 = arith.constant 0 : index
    %c0_8 = arith.constant 0 : index
    %9 = vector.load %arg5[%c0_7, %c0_8] : memref<32x128xbf16, #tpu.memory_space<vmem>>, vector<32x128xbf16>
    %c0_9 = arith.constant 0 : index
    %c0_10 = arith.constant 0 : index
    %10 = vector.load %arg6[%c0_9, %c0_10] : memref<128x256xbf16, #tpu.memory_space<vmem>>, vector<128x256xbf16>
    %cst_11 = arith.constant dense<0.000000e+00> : vector<32x256xf32>
    %11 = tpu.matmul %9, %10, %cst_11 {dimension_numbers = #tpu.dot_dimension_numbers<[1], [0], [0], [1], [0, 0, 1, 1], [], []>} : vector<32x128xbf16>, vector<128x256xbf16>, vector<32x256xf32> -> vector<32x256xf32>
    %c0_12 = arith.constant 0 : index
    %c0_13 = arith.constant 0 : index
    %12 = vector.load %arg7[%c0_12, %c0_13] : memref<1x256xf32, #tpu.memory_space<vmem>>, vector<1x256xf32>
    %13 = vector.broadcast %12 : vector<1x256xf32> to vector<32x256xf32>
    %14 = arith.mulf %11, %13 : vector<32x256xf32>
    %c0_14 = arith.constant 0 : index
    %c0_15 = arith.constant 0 : index
    %15 = vector.load %arg8[%c0_14, %c0_15] : memref<1x256xf32, #tpu.memory_space<vmem>>, vector<1x256xf32>
    %16 = vector.broadcast %15 : vector<1x256xf32> to vector<32x256xf32>
    %17 = arith.addf %14, %16 : vector<32x256xf32>
    %18 = arith.addf %8, %17 : vector<32x256xf32>
    %cst_16 = arith.constant 0.000000e+00 : f32
    %19 = vector.broadcast %cst_16 : f32 to vector<32x256xf32>
    %20 = arith.maximumf %18, %19 : vector<32x256xf32>
    %c0_17 = arith.constant 0 : index
    %c0_18 = arith.constant 0 : index
    %21 = vector.load %arg9[%c0_17, %c0_18] : memref<32x256xf32, #tpu.memory_space<vmem>>, vector<32x256xf32>
    tpu.vector_store %arg9[%c0_17, %c0_18], %20 {strides = array<i32>} : memref<32x256xf32, #tpu.memory_space<vmem>>, vector<32x256xf32>,
    return
  }
  func.func @transform_0(%arg0: i32) -> (i32, i32) {
    %c0_i32 = arith.constant 0 : i32
    %c0_i32_0 = arith.constant 0 : i32
    return %arg0, %c0_i32 : i32, i32
  }
  func.func @transform_1(%arg0: i32) -> (i32, i32) {
    %c0_i32 = arith.constant 0 : i32
    %c0_i32_0 = arith.constant 0 : i32
    %c0_i32_1 = arith.constant 0 : i32
    return %c0_i32, %c0_i32_0 : i32, i32
  }
  func.func @transform_2(%arg0: i32) -> (i32, i32) {
    %c0_i32 = arith.constant 0 : i32
    %c0_i32_0 = arith.constant 0 : i32
    %c0_i32_1 = arith.constant 0 : i32
    return %c0_i32, %c0_i32_0 : i32, i32
  }
  func.func @transform_3(%arg0: i32) -> (i32, i32) {
    %c0_i32 = arith.constant 0 : i32
    %c0_i32_0 = arith.constant 0 : i32
    %c0_i32_1 = arith.constant 0 : i32
    return %c0_i32, %c0_i32_0 : i32, i32
  }
  func.func @transform_4(%arg0: i32) -> (i32, i32) {
    %c0_i32 = arith.constant 0 : i32
    %c0_i32_0 = arith.constant 0 : i32
    return %arg0, %c0_i32 : i32, i32
  }
  func.func @transform_5(%arg0: i32) -> (i32, i32) {
    %c0_i32 = arith.constant 0 : i32
    %c0_i32_0 = arith.constant 0 : i32
    %c0_i32_1 = arith.constant 0 : i32
    return %c0_i32, %c0_i32_0 : i32, i32
  }
  func.func @transform_6(%arg0: i32) -> (i32, i32) {
    %c0_i32 = arith.constant 0 : i32
    %c0_i32_0 = arith.constant 0 : i32
    %c0_i32_1 = arith.constant 0 : i32
    return %c0_i32, %c0_i32_0 : i32, i32
  }
  func.func @transform_7(%arg0: i32) -> (i32, i32) {
    %c0_i32 = arith.constant 0 : i32
    %c0_i32_0 = arith.constant 0 : i32
    %c0_i32_1 = arith.constant 0 : i32
    return %c0_i32, %c0_i32_0 : i32, i32
  }
  func.func @transform_8(%arg0: i32) -> (i32, i32) {
    %c0_i32 = arith.constant 0 : i32
    %c0_i32_0 = arith.constant 0 : i32
    return %arg0, %c0_i32 : i32, i32
  }
}

module attributes {stable_mosaic.version = 11 : i64} {
  func.func @_mm_bn_kernel(%arg0: i32, %arg1: memref<32x640xbf16, #tpu.memory_space<vmem>>, %arg2: memref<640x128xbf16, #tpu.memory_space<vmem>>, %arg3: memref<1x128xf32, #tpu.memory_space<vmem>>, %arg4: memref<1x128xf32, #tpu.memory_space<vmem>>, %arg5: memref<32x128xbf16, #tpu.memory_space<vmem>>) attributes {dimension_semantics = [#tpu.dimension_semantics<parallel>], iteration_bounds = array<i64: 1>, scalar_prefetch = 0 : i64, scratch_operands = 0 : i64, tpu.core_type = #tpu.core_type<tc>, window_params = [{transform_indices = @transform_0, window_bounds = array<i64: 32, 640>}, {pipeline_mode = #tpu.pipeline_mode<synchronous>, transform_indices = @transform_1, window_bounds = array<i64: 640, 128>}, {pipeline_mode = #tpu.pipeline_mode<synchronous>, transform_indices = @transform_2, window_bounds = array<i64: 1, 128>}, {pipeline_mode = #tpu.pipeline_mode<synchronous>, transform_indices = @transform_3, window_bounds = array<i64: 1, 128>}, {transform_indices = @transform_4, window_bounds = array<i64: 32, 128>}]} {
    %c0 = arith.constant 0 : index
    %c0_0 = arith.constant 0 : index
    %0 = vector.load %arg1[%c0, %c0_0] : memref<32x640xbf16, #tpu.memory_space<vmem>>, vector<32x640xbf16>
    %c0_1 = arith.constant 0 : index
    %c0_2 = arith.constant 0 : index
    %1 = vector.load %arg2[%c0_1, %c0_2] : memref<640x128xbf16, #tpu.memory_space<vmem>>, vector<640x128xbf16>
    %cst = arith.constant dense<0.000000e+00> : vector<32x128xf32>
    %2 = tpu.matmul %0, %1, %cst {dimension_numbers = #tpu.dot_dimension_numbers<[1], [0], [0], [1], [0, 0, 1, 1], [], []>} : vector<32x640xbf16>, vector<640x128xbf16>, vector<32x128xf32> -> vector<32x128xf32>
    %c0_3 = arith.constant 0 : index
    %c0_4 = arith.constant 0 : index
    %3 = vector.load %arg3[%c0_3, %c0_4] : memref<1x128xf32, #tpu.memory_space<vmem>>, vector<1x128xf32>
    %4 = vector.broadcast %3 : vector<1x128xf32> to vector<32x128xf32>
    %5 = arith.mulf %2, %4 : vector<32x128xf32>
    %c0_5 = arith.constant 0 : index
    %c0_6 = arith.constant 0 : index
    %6 = vector.load %arg4[%c0_5, %c0_6] : memref<1x128xf32, #tpu.memory_space<vmem>>, vector<1x128xf32>
    %7 = vector.broadcast %6 : vector<1x128xf32> to vector<32x128xf32>
    %8 = arith.addf %5, %7 : vector<32x128xf32>
    %cst_7 = arith.constant 0.000000e+00 : f32
    %9 = vector.broadcast %cst_7 : f32 to vector<32x128xf32>
    %10 = arith.maximumf %8, %9 : vector<32x128xf32>
    %11 = arith.truncf %10 : vector<32x128xf32> to vector<32x128xbf16>
    %c0_8 = arith.constant 0 : index
    %c0_9 = arith.constant 0 : index
    %12 = vector.load %arg5[%c0_8, %c0_9] : memref<32x128xbf16, #tpu.memory_space<vmem>>, vector<32x128xbf16>
    tpu.vector_store %arg5[%c0_8, %c0_9], %11 {strides = array<i32>} : memref<32x128xbf16, #tpu.memory_space<vmem>>, vector<32x128xbf16>,
    return
  }
  func.func @transform_0(%arg0: i32) -> (i32, i32) {
    %c0_i32 = arith.constant 0 : i32
    %c0_i32_0 = arith.constant 0 : i32
    return %arg0, %c0_i32 : i32, i32
  }
  func.func @transform_1(%arg0: i32) -> (i32, i32) {
    %c0_i32 = arith.constant 0 : i32
    %c0_i32_0 = arith.constant 0 : i32
    %c0_i32_1 = arith.constant 0 : i32
    return %c0_i32, %c0_i32_0 : i32, i32
  }
  func.func @transform_2(%arg0: i32) -> (i32, i32) {
    %c0_i32 = arith.constant 0 : i32
    %c0_i32_0 = arith.constant 0 : i32
    %c0_i32_1 = arith.constant 0 : i32
    return %c0_i32, %c0_i32_0 : i32, i32
  }
  func.func @transform_3(%arg0: i32) -> (i32, i32) {
    %c0_i32 = arith.constant 0 : i32
    %c0_i32_0 = arith.constant 0 : i32
    %c0_i32_1 = arith.constant 0 : i32
    return %c0_i32, %c0_i32_0 : i32, i32
  }
  func.func @transform_4(%arg0: i32) -> (i32, i32) {
    %c0_i32 = arith.constant 0 : i32
    %c0_i32_0 = arith.constant 0 : i32
    return %arg0, %c0_i32 : i32, i32
  }
}

</mosaic_0001>

<bundles_post_ra>
// kernel: backbone_forward.6
= control target key start
LH: loop header
LB: loop body
LE: loop exit
PB: predicated region body
PF: predicated region fallthrough
CT: control target
= control target key end

     0   :  { %s294_s0 = inlined_call_operand.vmem [shape: bf16[9,32,128], index: 0, kind: input, shape index: {}]   ;;  %s295_s1 = inlined_call_operand.vmem [shape: bf16[32,128], index: 1, kind: output, shape index: {}]  }
   0x1   :  { %v125_v0 = vld [vmem:[%s294_s0] sm:$0xff]   ;;  %v207_v1 = vld [vmem:[%s294_s0 + $0x10] sm:$0xff]   ;;  %v206_v15 = vld [vmem:[%s294_s0 + $0x8] sm:$0xff]  }
   0x2   :  { %v209_v2 = vld [vmem:[%s294_s0 + $0x20] sm:$0xff]   ;;  %v126_v3 = vunpack.c.l.bf16 %v125_v0  ;;  %v127_v4 = vunpack.c.h.bf16 %v125_v0  ;;  %v134_v5 = vunpack.c.l.bf16 %v207_v1  ;;  %v135_v6 = vunpack.c.h.bf16 %v207_v1  ;;  %v211_v7 = vld [vmem:[%s294_s0 + $0x30] sm:$0xff]   ;;  %v208_v16 = vld [vmem:[%s294_s0 + $0x18] sm:$0xff]  }
   0x3   :  { %v142_v8 = vunpack.c.l.bf16 %v209_v2  ;;  %v143_v9 = vunpack.c.h.bf16 %v209_v2  ;;  %v213_v10 = vld [vmem:[%s294_s0 + $0x40] sm:$0xff]   ;;  %v150_v11 = vunpack.c.l.bf16 %v211_v7  ;;  %v151_v12 = vunpack.c.h.bf16 %v211_v7  ;;  %v215_v17 = vld [vmem:[%s294_s0 + $0x50] sm:$0xff]   ;;  %v210_v22 = vld [vmem:[%s294_s0 + $0x28] sm:$0xff]  }
   0x4   :  { %v80_v13 = vmax.f32 %v126_v3, %v134_v5  ;;  %v88_v14 = vmax.f32 %v127_v4, %v135_v6  ;;  %v158_v18 = vunpack.c.l.bf16 %v213_v10  ;;  %v159_v19 = vunpack.c.h.bf16 %v213_v10  ;;  %v217_v23 = vld [vmem:[%s294_s0 + $0x60] sm:$0xff]   ;;  %v212_v32 = vld [vmem:[%s294_s0 + $0x38] sm:$0xff]   ;;  %v219_v33 = vld [vmem:[%s294_s0 + $0x70] sm:$0xff]  }
   0x5   :  { %v130_v24 = vunpack.c.l.bf16 %v206_v15  ;;  %v131_v25 = vunpack.c.h.bf16 %v206_v15  ;;  %v138_v26 = vunpack.c.l.bf16 %v208_v16  ;;  %v139_v27 = vunpack.c.h.bf16 %v208_v16  ;;  %v214_v40 = vld [vmem:[%s294_s0 + $0x48] sm:$0xff]   ;;  %v221_v41 = vld [vmem:[%s294_s0 + $0x80] sm:$0xff]   ;;  %v216_v50 = vld [vmem:[%s294_s0 + $0x58] sm:$0xff]  }
   0x6   :  { %v81_v20 = vmax.f32 %v80_v13, %v142_v8  ;;  %v89_v21 = vmax.f32 %v88_v14, %v143_v9  ;;  %v166_v28 = vunpack.c.l.bf16 %v215_v17  ;;  %v167_v29 = vunpack.c.h.bf16 %v215_v17  ;;  %v218_v59 = vld [vmem:[%s294_s0 + $0x68] sm:$0xff]   ;;  %v220_v2 = vld [vmem:[%s294_s0 + $0x78] sm:$0xff]  }
   0x7   :  { %v146_v34 = vunpack.c.l.bf16 %v210_v22  ;;  %v147_v35 = vunpack.c.h.bf16 %v210_v22  ;;  %v174_v36 = vunpack.c.l.bf16 %v217_v23  ;;  %v175_v37 = vunpack.c.h.bf16 %v217_v23  ;;  %v222_v9 = vld [vmem:[%s294_s0 + $0x88] sm:$0xff]  }
   0x8   :  { %v82_v30 = vmax.f32 %v81_v20, %v150_v11  ;;  %v90_v31 = vmax.f32 %v89_v21, %v151_v12  ;;  %v154_v42 = vunpack.c.l.bf16 %v212_v32  ;;  %v155_v43 = vunpack.c.h.bf16 %v212_v32 }
   0x9   :  { %v96_v44 = vmax.f32 %v130_v24, %v138_v26  ;;  %v104_v45 = vmax.f32 %v131_v25, %v139_v27  ;;  %v182_v46 = vunpack.c.l.bf16 %v219_v33  ;;  %v183_v47 = vunpack.c.h.bf16 %v219_v33 }
   0xa   :  { %v83_v38 = vmax.f32 %v82_v30, %v158_v18  ;;  %v91_v39 = vmax.f32 %v90_v31, %v159_v19  ;;  %v162_v51 = vunpack.c.l.bf16 %v214_v40  ;;  %v163_v52 = vunpack.c.h.bf16 %v214_v40 }
   0xb   :  { %v97_v53 = vmax.f32 %v96_v44, %v146_v34  ;;  %v105_v54 = vmax.f32 %v104_v45, %v147_v35  ;;  %v190_v55 = vunpack.c.l.bf16 %v221_v41  ;;  %v191_v56 = vunpack.c.h.bf16 %v221_v41 }
   0xc   :  { %v84_v48 = vmax.f32 %v83_v38, %v166_v28  ;;  %v92_v49 = vmax.f32 %v91_v39, %v167_v29  ;;  %v170_v60 = vunpack.c.l.bf16 %v216_v50  ;;  %v171_v61 = vunpack.c.h.bf16 %v216_v50 }
   0xd   :  { %v98_v62 = vmax.f32 %v97_v53, %v154_v42  ;;  %v106_v63 = vmax.f32 %v105_v54, %v155_v43  ;;  %v178_v3 = vunpack.c.l.bf16 %v218_v59  ;;  %v179_v4 = vunpack.c.h.bf16 %v218_v59 }
   0xe   :  { %v85_v57 = vmax.f32 %v84_v48, %v174_v36  ;;  %v93_v58 = vmax.f32 %v92_v49, %v175_v37  ;;  %v186_v10 = vunpack.c.l.bf16 %v220_v2  ;;  %v187_v11 = vunpack.c.h.bf16 %v220_v2 }
   0xf   :  { %v99_v5 = vmax.f32 %v98_v62, %v162_v51  ;;  %v107_v6 = vmax.f32 %v106_v63, %v163_v52  ;;  %v194_v15 = vunpack.c.l.bf16 %v222_v9  ;;  %v195_v16 = vunpack.c.h.bf16 %v222_v9 }
  0x10   :  { %v86_v0 = vmax.f32 %v85_v57, %v182_v46  ;;  %v94_v1 = vmax.f32 %v93_v58, %v183_v47 }
  0x11   :  { %v100_v12 = vmax.f32 %v99_v5, %v170_v60  ;;  %v108_v13 = vmax.f32 %v107_v6, %v171_v61 }
  0x12   :  { %v87_v7 = vmax.f32 %v86_v0, %v190_v55  ;;  %v95_v8 = vmax.f32 %v94_v1, %v191_v56 }
  0x13   :  { %v101_v17 = vmax.f32 %v100_v12, %v178_v3  ;;  %v109_v18 = vmax.f32 %v108_v13, %v179_v4 }
  0x14   :  { %v199_v14 = vpack.c.bf16 %v95_v8, %v87_v7 }
  0x15   :  { %v102_v19 = vmax.f32 %v101_v17, %v186_v10  ;;  %v110_v20 = vmax.f32 %v109_v18, %v187_v11 }
  0x16   :  { %200 = vst [vmem:[%s295_s1] sm:$0xff] %v199_v14  }
  0x17   :  { %v103_v21 = vmax.f32 %v102_v19, %v194_v15  ;;  %v111_v22 = vmax.f32 %v110_v20, %v195_v16 }
  0x19   :  { %v204_v23 = vpack.c.bf16 %v111_v22, %v103_v21 }
  0x1b   :  { %223 = vst [vmem:[%s295_s1 + $0x8] sm:$0xff] %v204_v23  }

// kernel: backbone_forward.5
= control target key start
LH: loop header
LB: loop body
LE: loop exit
PB: predicated region body
PF: predicated region fallthrough
CT: control target
= control target key end

     0   :  { %s891_s1 = inlined_call_operand.vmem [shape: bf16[256,128], index: 1, kind: input, shape index: {}]   ;;  %s892_s0 = inlined_call_operand.vmem [shape: bf16[128,256], index: 0, kind: input, shape index: {}]   ;;  %s893_s2 = inlined_call_operand.vmem [shape: f32[1,128], index: 2, kind: input, shape index: {}]   ;;  %s894_s3 = inlined_call_operand.vmem [shape: f32[1,128], index: 3, kind: input, shape index: {}]   ;;  %s895_s4 = inlined_call_operand.vmem [shape: bf16[128,128], index: 4, kind: output, shape index: {}]  }
   0x1   :  { %v582_v0 = vld [vmem:[%s891_s1 + $0x38] sm:$0xff]  ;;  %v581_v2 = vld [vmem:[%s891_s1 + $0x30] sm:$0xff]  ;;  %v580_v4 = vld [vmem:[%s891_s1 + $0x28] sm:$0xff] }
   0x2   :  { %v590_v1 = vld [vmem:[%s891_s1 + $0x78] sm:$0xff]  ;;  %241 = vmatpush.bf16.msra.mxu0 %v582_v0  ;;  %638 = vmatpush.bf16.msra.mxu2 %v582_v0  ;;  %v589_v3 = vld [vmem:[%s891_s1 + $0x70] sm:$0xff]  ;;  %v588_v5 = vld [vmem:[%s891_s1 + $0x68] sm:$0xff] }
   0x3   :  { %290 = vmatpush.bf16.msra.mxu1 %v590_v1  ;;  %646 = vmatpush.bf16.msra.mxu3 %v590_v1  ;;  %v579_v6 = vld [vmem:[%s891_s1 + $0x20] sm:$0xff]  ;;  %v578_v8 = vld [vmem:[%s891_s1 + $0x18] sm:$0xff]  ;;  %v577_v10 = vld [vmem:[%s891_s1 + $0x10] sm:$0xff] }
   0x4   :  { %v587_v7 = vld [vmem:[%s891_s1 + $0x60] sm:$0xff]  ;;  %v586_v9 = vld [vmem:[%s891_s1 + $0x58] sm:$0xff]  ;;  %v585_v11 = vld [vmem:[%s891_s1 + $0x50] sm:$0xff] }
   0x5   :  { %v576_v12 = vld [vmem:[%s891_s1 + $0x8] sm:$0xff]  ;;  %v575_v14 = vld [vmem:[%s891_s1] sm:$0xff]  ;;  %v441_v28 = vld [vmem:[%s892_s0 + $0x10] sm:$0xf] }
   0x6   :  { %242 = vmatpush.bf16.msra.mxu0 %v581_v2  ;;  %639 = vmatpush.bf16.msra.mxu2 %v581_v2  ;;  %v584_v13 = vld [vmem:[%s891_s1 + $0x48] sm:$0xff]  ;;  %v583_v15 = vld [vmem:[%s891_s1 + $0x40] sm:$0xff]  ;;  %v562_v29 = vld [vmem:[%s892_s0 + $0x14] sm:$0xf0] }
   0x7   :  { %291 = vmatpush.bf16.msra.mxu1 %v589_v3  ;;  %647 = vmatpush.bf16.msra.mxu3 %v589_v3  ;;  %v433_v16 = vld [vmem:[%s892_s0] sm:$0xf]  ;;  %v560_v17 = vld [vmem:[%s892_s0 + $0x4] sm:$0xf0]  ;;  %v559_v20 = vld [vmem:[%s892_s0 + $0x4] sm:$0xf]  ;;  %v442_v36 = vor.u32 %v562_v29, %v441_v28 }
   0x8   :  { %v465_v18 = vld [vmem:[%s892_s0 + $0x40] sm:$0xf]  ;;  %v568_v19 = vld [vmem:[%s892_s0 + $0x44] sm:$0xf0]  ;;  %v435_v21 = vld [vmem:[%s892_s0 + $0x8] sm:$0xf0]  ;;  %v434_v24 = vor.u32 %v560_v17, %v433_v16 }
   0x9   :  { %v567_v22 = vld [vmem:[%s892_s0 + $0x44] sm:$0xf]  ;;  %v467_v23 = vld [vmem:[%s892_s0 + $0x48] sm:$0xf0]  ;;  %v466_v25 = vor.u32 %v568_v19, %v465_v18  ;;  %v438_v26 = vor.u32 %v559_v20, %v435_v21  ;;  %v473_v30 = vld [vmem:[%s892_s0 + $0x50] sm:$0xf] }
   0xa   :  { %243 = vmatpush.bf16.msra.mxu0 %v580_v4  ;;  %640 = vmatpush.bf16.msra.mxu2 %v580_v4  ;;  %v470_v27 = vor.u32 %v567_v22, %v467_v23  ;;  %v570_v31 = vld [vmem:[%s892_s0 + $0x54] sm:$0xf0]  ;;  %v561_v32 = vld [vmem:[%s892_s0 + $0x14] sm:$0xf]  ;;  %v443_v33 = vld [vmem:[%s892_s0 + $0x18] sm:$0xf0] }
   0xb   :  { %292 = vmatpush.bf16.msra.mxu1 %v588_v5  ;;  %648 = vmatpush.bf16.msra.mxu3 %v588_v5  ;;  %v569_v34 = vld [vmem:[%s892_s0 + $0x54] sm:$0xf]  ;;  %v475_v35 = vld [vmem:[%s892_s0 + $0x58] sm:$0xf0]  ;;  %v474_v37 = vor.u32 %v570_v31, %v473_v30  ;;  %v446_v38 = vor.u32 %v561_v32, %v443_v33  ;;  %v449_v40 = vld [vmem:[%s892_s0 + $0x20] sm:$0xf] }
   0xc   :  { %v478_v39 = vor.u32 %v569_v34, %v475_v35  ;;  %v564_v41 = vld [vmem:[%s892_s0 + $0x24] sm:$0xf0]  ;;  %v481_v42 = vld [vmem:[%s892_s0 + $0x60] sm:$0xf]  ;;  %v563_v44 = vld [vmem:[%s892_s0 + $0x24] sm:$0xf] }
   0xd   :  { %v572_v43 = vld [vmem:[%s892_s0 + $0x64] sm:$0xf0]  ;;  %v451_v45 = vld [vmem:[%s892_s0 + $0x28] sm:$0xf0]  ;;  %v571_v46 = vld [vmem:[%s892_s0 + $0x64] sm:$0xf]  ;;  %v450_v48 = vor.u32 %v564_v41, %v449_v40 }
   0xe   :  { %244 = vmatpush.bf16.msra.mxu0 %v579_v6  ;;  %641 = vmatpush.bf16.msra.mxu2 %v579_v6  ;;  %v483_v47 = vld [vmem:[%s892_s0 + $0x68] sm:$0xf0]  ;;  %v482_v49 = vor.u32 %v572_v43, %v481_v42  ;;  %v454_v50 = vor.u32 %v563_v44, %v451_v45  ;;  %v457_v52 = vld [vmem:[%s892_s0 + $0x30] sm:$0xf]  ;;  %v566_v53 = vld [vmem:[%s892_s0 + $0x34] sm:$0xf0] }
   0xf   :  { %293 = vmatpush.bf16.msra.mxu1 %v587_v7  ;;  %649 = vmatpush.bf16.msra.mxu3 %v587_v7  ;;  %v486_v51 = vor.u32 %v571_v46, %v483_v47  ;;  %v489_v54 = vld [vmem:[%s892_s0 + $0x70] sm:$0xf]  ;;  %v574_v55 = vld [vmem:[%s892_s0 + $0x74] sm:$0xf0]  ;;  %v565_v56 = vld [vmem:[%s892_s0 + $0x34] sm:$0xf]  ;;  %v458_v60 = vor.u32 %v566_v53, %v457_v52 }
  0x10   :  { %v459_v57 = vld [vmem:[%s892_s0 + $0x38] sm:$0xf0]  ;;  %v573_v58 = vld [vmem:[%s892_s0 + $0x74] sm:$0xf]  ;;  %v490_v61 = vor.u32 %v574_v55, %v489_v54  ;;  %v828_v3 = vld [vmem:[%s893_s2] ss:$0 sm:$0xff] }
  0x11   :  { %v491_v59 = vld [vmem:[%s892_s0 + $0x78] sm:$0xf0]  ;;  %v462_v62 = vor.u32 %v565_v56, %v459_v57  ;;  %v834_v7 = vld [vmem:[%s894_s3] ss:$0 sm:$0xff] }
  0x12   :  { %245 = vmatpush.bf16.msra.mxu0 %v578_v8  ;;  %642 = vmatpush.bf16.msra.mxu2 %v578_v8  ;;  %v494_v63 = vor.u32 %v573_v58, %v491_v59 }
  0x13   :  { %294 = vmatpush.bf16.msra.mxu1 %v586_v9  ;;  %650 = vmatpush.bf16.msra.mxu3 %v586_v9 }
  0x16   :  { %246 = vmatpush.bf16.msra.mxu0 %v577_v10  ;;  %643 = vmatpush.bf16.msra.mxu2 %v577_v10 }
  0x17   :  { %295 = vmatpush.bf16.msra.mxu1 %v585_v11  ;;  %651 = vmatpush.bf16.msra.mxu3 %v585_v11 }
  0x1a   :  { %247 = vmatpush.bf16.msra.mxu0 %v576_v12  ;;  %644 = vmatpush.bf16.msra.mxu2 %v576_v12 }
  0x1b   :  { %296 = vmatpush.bf16.msra.mxu1 %v584_v13  ;;  %652 = vmatpush.bf16.msra.mxu3 %v584_v13 }
  0x1e   :  { %248 = vmatpush.bf16.msra.mxu0 %v575_v14  ;;  %645 = vmatpush.bf16.msra.mxu2 %v575_v14 }
  0x1f   :  { %297 = vmatpush.bf16.msra.mxu1 %v583_v15  ;;  %653 = vmatpush.bf16.msra.mxu3 %v583_v15 }
  0x21   :  { %249 = vmatmul.bf16.vlgmr.msra.gmra.mxu0 %v434_v24  ;;  %269 = vmatmul.bf16.vlgmr.msra.gmra.mxu2 %v466_v25 }
  0x22   :  { %298 = vmatmul.bf16.vlgmr.msra.gmra.mxu1 %v438_v26  ;;  %318 = vmatmul.bf16.vlgmr.msra.gmra.mxu3 %v470_v27 }
  0x31   :  { %254 = vmatmul.bf16.gmra.mxu0 %v442_v36  ;;  %274 = vmatmul.bf16.gmra.mxu2 %v474_v37 }
  0x32   :  { %303 = vmatmul.bf16.gmra.mxu1 %v446_v38  ;;  %323 = vmatmul.bf16.gmra.mxu3 %v478_v39 }
  0x41   :  { %259 = vmatmul.bf16.gmra.mxu0 %v450_v48  ;;  %279 = vmatmul.bf16.gmra.mxu2 %v482_v49 }
  0x42   :  { %308 = vmatmul.bf16.gmra.mxu1 %v454_v50  ;;  %328 = vmatmul.bf16.gmra.mxu3 %v486_v51 }
  0x51   :  { %264 = vmatmul.bf16.gmra.mxu0 %v458_v60  ;;  %284 = vmatmul.bf16.gmra.mxu2 %v490_v61 }
  0x52   :  { %313 = vmatmul.bf16.gmra.mxu1 %v462_v62  ;;  %333 = vmatmul.bf16.gmra.mxu3 %v494_v63 }
  0x9e   :  { %v250_v0 = vpop.f32.mrf.mxu0 }
  0x9f   :  { %v299_v1 = vpop.f32.mrf.mxu1 }
  0xa0   :  { %v300_v2 = vadd.f32 %v299_v1, %v250_v0 }
  0xa2   :  { %v343_v6 = vmul.f32 %v828_v3, %v300_v2 }
  0xa4   :  { %v270_v4 = vpop.f32.mrf.mxu2  ;;  %v363_v12 = vadd.f32 %v834_v7, %v343_v6 }
  0xa5   :  { %v319_v5 = vpop.f32.mrf.mxu3 }
  0xa6   :  { %v252_v8 = vpop.f32.mrf.mxu0  ;;  %v320_v10 = vadd.f32 %v319_v5, %v270_v4  ;;  %v379_v18 = vmax.f32 %v363_v12, 0.0 }
  0xa7   :  { %v301_v9 = vpop.f32.mrf.mxu1 }
  0xa8   :  { %v302_v11 = vadd.f32 %v301_v9, %v252_v8  ;;  %v351_v14 = vmul.f32 %v828_v3, %v320_v10 }
  0xaa   :  { %v344_v13 = vmul.f32 %v828_v3, %v302_v11  ;;  %v371_v23 = vadd.f32 %v834_v7, %v351_v14 }
  0xac   :  { %v364_v15 = vadd.f32 %v834_v7, %v344_v13  ;;  %v272_v16 = vpop.f32.mrf.mxu2  ;;  %v387_v28 = vmax.f32 %v371_v23, 0.0 }
  0xad   :  { %v321_v17 = vpop.f32.mrf.mxu3 }
  0xae   :  { %v380_v19 = vmax.f32 %v364_v15, 0.0  ;;  %v322_v20 = vadd.f32 %v321_v17, %v272_v16  ;;  %v255_v21 = vpop.f32.mrf.mxu0 }
  0xaf   :  { %v304_v22 = vpop.f32.mrf.mxu1 }
  0xb0   :  { %v594_v24 = vpack.c.bf16 %v380_v19, %v379_v18  ;;  %v352_v25 = vmul.f32 %v828_v3, %v322_v20  ;;  %v305_v27 = vadd.f32 %v304_v22, %v255_v21 }
  0xb2   :  { %595 = vst [vmem:[%s895_s4] sm:$0xff] %v594_v24   ;;  %v372_v26 = vadd.f32 %v834_v7, %v352_v25  ;;  %v345_v33 = vmul.f32 %v828_v3, %v305_v27 }
  0xb4   :  { %v388_v29 = vmax.f32 %v372_v26, 0.0  ;;  %v275_v30 = vpop.f32.mrf.mxu2  ;;  %v365_v38 = vadd.f32 %v834_v7, %v345_v33 }
  0xb5   :  { %v324_v31 = vpop.f32.mrf.mxu3 }
  0xb6   :  { %v614_v32 = vpack.c.bf16 %v388_v29, %v387_v28  ;;  %v257_v34 = vpop.f32.mrf.mxu0  ;;  %v325_v36 = vadd.f32 %v324_v31, %v275_v30  ;;  %v381_v44 = vmax.f32 %v365_v38, 0.0 }
  0xb7   :  { %v306_v35 = vpop.f32.mrf.mxu1 }
  0xb8   :  { %634 = vst [vmem:[%s895_s4 + $0x20] sm:$0xff] %v614_v32   ;;  %v307_v37 = vadd.f32 %v306_v35, %v257_v34  ;;  %v353_v40 = vmul.f32 %v828_v3, %v325_v36 }
  0xba   :  { %v346_v39 = vmul.f32 %v828_v3, %v307_v37  ;;  %v373_v49 = vadd.f32 %v834_v7, %v353_v40 }
  0xbc   :  { %v366_v41 = vadd.f32 %v834_v7, %v346_v39  ;;  %v277_v42 = vpop.f32.mrf.mxu2  ;;  %v389_v54 = vmax.f32 %v373_v49, 0.0 }
  0xbd   :  { %v326_v43 = vpop.f32.mrf.mxu3 }
  0xbe   :  { %v382_v45 = vmax.f32 %v366_v41, 0.0  ;;  %v327_v46 = vadd.f32 %v326_v43, %v277_v42  ;;  %v260_v47 = vpop.f32.mrf.mxu0 }
  0xbf   :  { %v309_v48 = vpop.f32.mrf.mxu1 }
  0xc0   :  { %v599_v50 = vpack.c.bf16 %v382_v45, %v381_v44  ;;  %v354_v51 = vmul.f32 %v828_v3, %v327_v46  ;;  %v310_v53 = vadd.f32 %v309_v48, %v260_v47 }
  0xc2   :  { %631 = vst [vmem:[%s895_s4 + $0x8] sm:$0xff] %v599_v50   ;;  %v374_v52 = vadd.f32 %v834_v7, %v354_v51  ;;  %v347_v59 = vmul.f32 %v828_v3, %v310_v53 }
  0xc4   :  { %v390_v55 = vmax.f32 %v374_v52, 0.0  ;;  %v280_v56 = vpop.f32.mrf.mxu2  ;;  %v367_v0 = vadd.f32 %v834_v7, %v347_v59 }
  0xc5   :  { %v329_v57 = vpop.f32.mrf.mxu3 }
  0xc6   :  { %v619_v58 = vpack.c.bf16 %v390_v55, %v389_v54  ;;  %v262_v60 = vpop.f32.mrf.mxu0  ;;  %v330_v62 = vadd.f32 %v329_v57, %v280_v56  ;;  %v383_v8 = vmax.f32 %v367_v0, 0.0 }
  0xc7   :  { %v311_v61 = vpop.f32.mrf.mxu1 }
  0xc8   :  { %635 = vst [vmem:[%s895_s4 + $0x28] sm:$0xff] %v619_v58   ;;  %v312_v63 = vadd.f32 %v311_v61, %v262_v60  ;;  %v355_v2 = vmul.f32 %v828_v3, %v330_v62 }
  0xca   :  { %v348_v1 = vmul.f32 %v828_v3, %v312_v63  ;;  %v375_v13 = vadd.f32 %v834_v7, %v355_v2 }
  0xcc   :  { %v368_v4 = vadd.f32 %v834_v7, %v348_v1  ;;  %v282_v5 = vpop.f32.mrf.mxu2  ;;  %v391_v18 = vmax.f32 %v375_v13, 0.0 }
  0xcd   :  { %v331_v6 = vpop.f32.mrf.mxu3 }
  0xce   :  { %v384_v9 = vmax.f32 %v368_v4, 0.0  ;;  %v332_v10 = vadd.f32 %v331_v6, %v282_v5  ;;  %v265_v11 = vpop.f32.mrf.mxu0 }
  0xcf   :  { %v314_v12 = vpop.f32.mrf.mxu1 }
  0xd0   :  { %v604_v14 = vpack.c.bf16 %v384_v9, %v383_v8  ;;  %v356_v15 = vmul.f32 %v828_v3, %v332_v10  ;;  %v315_v17 = vadd.f32 %v314_v12, %v265_v11 }
  0xd2   :  { %632 = vst [vmem:[%s895_s4 + $0x10] sm:$0xff] %v604_v14   ;;  %v376_v16 = vadd.f32 %v834_v7, %v356_v15  ;;  %v349_v23 = vmul.f32 %v828_v3, %v315_v17 }
  0xd4   :  { %v392_v19 = vmax.f32 %v376_v16, 0.0  ;;  %v285_v20 = vpop.f32.mrf.mxu2  ;;  %v369_v28 = vadd.f32 %v834_v7, %v349_v23 }
  0xd5   :  { %v334_v21 = vpop.f32.mrf.mxu3 }
  0xd6   :  { %v624_v22 = vpack.c.bf16 %v392_v19, %v391_v18  ;;  %v267_v24 = vpop.f32.mrf.mxu0  ;;  %v335_v26 = vadd.f32 %v334_v21, %v285_v20  ;;  %v385_v34 = vmax.f32 %v369_v28, 0.0 }
  0xd7   :  { %v316_v25 = vpop.f32.mrf.mxu1 }
  0xd8   :  { %636 = vst [vmem:[%s895_s4 + $0x30] sm:$0xff] %v624_v22   ;;  %v317_v27 = vadd.f32 %v316_v25, %v267_v24  ;;  %v357_v30 = vmul.f32 %v828_v3, %v335_v26 }
  0xda   :  { %v350_v29 = vmul.f32 %v828_v3, %v317_v27  ;;  %v377_v37 = vadd.f32 %v834_v7, %v357_v30 }
  0xdc   :  { %v370_v31 = vadd.f32 %v834_v7, %v350_v29  ;;  %v287_v32 = vpop.f32.mrf.mxu2  ;;  %v393_v41 = vmax.f32 %v377_v37, 0.0 }
  0xdd   :  { %v336_v33 = vpop.f32.mrf.mxu3 }
  0xde   :  { %v386_v35 = vmax.f32 %v370_v31, 0.0  ;;  %v337_v36 = vadd.f32 %v336_v33, %v287_v32 }
  0xe0   :  { %v609_v38 = vpack.c.bf16 %v386_v35, %v385_v34  ;;  %v358_v39 = vmul.f32 %v828_v3, %v337_v36 }
  0xe2   :  { %633 = vst [vmem:[%s895_s4 + $0x18] sm:$0xff] %v609_v38   ;;  %v378_v40 = vadd.f32 %v834_v7, %v358_v39 }
  0xe4   :  { %v394_v42 = vmax.f32 %v378_v40, 0.0 }
  0xe6   :  { %v629_v43 = vpack.c.bf16 %v394_v42, %v393_v41 }
  0xe8   :  { %637 = vst [vmem:[%s895_s4 + $0x38] sm:$0xff] %v629_v43  }

// kernel: backbone_forward.7
= control target key start
LH: loop header
LB: loop body
LE: loop exit
PB: predicated region body
PF: predicated region fallthrough
CT: control target
= control target key end

     0   :  { %s286_s1 = inlined_call_operand.vmem [shape: bf16[128,128], index: 1, kind: input, shape index: {}]   ;;  %s287_s2 = inlined_call_operand.vmem [shape: f32[1,128], index: 2, kind: input, shape index: {}]   ;;  %s288_s3 = inlined_call_operand.vmem [shape: f32[1,128], index: 3, kind: input, shape index: {}]   ;;  %s289_s0 = inlined_call_operand.vmem [shape: bf16[32,128], index: 0, kind: input, shape index: {}]   ;;  %s290_s4 = inlined_call_operand.vmem [shape: bf16[32,128], index: 4, kind: output, shape index: {}]  }
   0x1   :  { %v197_v0 = vld [vmem:[%s286_s1 + $0x38] sm:$0xff]  ;;  %v196_v1 = vld [vmem:[%s286_s1 + $0x30] sm:$0xff]  ;;  %v195_v2 = vld [vmem:[%s286_s1 + $0x28] sm:$0xff] }
   0x2   :  { %97 = vmatpush.bf16.msra.mxu0 %v197_v0  ;;  %209 = vmatpush.bf16.msra.mxu1 %v197_v0  ;;  %v194_v3 = vld [vmem:[%s286_s1 + $0x20] sm:$0xff]  ;;  %v193_v4 = vld [vmem:[%s286_s1 + $0x18] sm:$0xff]  ;;  %v192_v5 = vld [vmem:[%s286_s1 + $0x10] sm:$0xff] }
   0x3   :  { %v191_v6 = vld [vmem:[%s286_s1 + $0x8] sm:$0xff]  ;;  %v190_v7 = vld [vmem:[%s286_s1] sm:$0xff] }
   0x4   :  { %v188_v8 = vld [vmem:[%s289_s0] sm:$0xff]  ;;  %v189_v9 = vld [vmem:[%s289_s0 + $0x8] sm:$0xff] }
   0x5   :  { %v217_v12 = vld [vmem:[%s287_s2] ss:$0 sm:$0xff] }
   0x6   :  { %98 = vmatpush.bf16.msra.mxu0 %v196_v1  ;;  %210 = vmatpush.bf16.msra.mxu1 %v196_v1  ;;  %v218_v14 = vld [vmem:[%s288_s3] ss:$0 sm:$0xff] }
   0xa   :  { %99 = vmatpush.bf16.msra.mxu0 %v195_v2  ;;  %211 = vmatpush.bf16.msra.mxu1 %v195_v2 }
   0xe   :  { %100 = vmatpush.bf16.msra.mxu0 %v194_v3  ;;  %212 = vmatpush.bf16.msra.mxu1 %v194_v3 }
  0x12   :  { %101 = vmatpush.bf16.msra.mxu0 %v193_v4  ;;  %213 = vmatpush.bf16.msra.mxu1 %v193_v4 }
  0x16   :  { %102 = vmatpush.bf16.msra.mxu0 %v192_v5  ;;  %214 = vmatpush.bf16.msra.mxu1 %v192_v5 }
  0x1a   :  { %103 = vmatpush.bf16.msra.mxu0 %v191_v6  ;;  %215 = vmatpush.bf16.msra.mxu1 %v191_v6 }
  0x1e   :  { %104 = vmatpush.bf16.msra.mxu0 %v190_v7  ;;  %216 = vmatpush.bf16.msra.mxu1 %v190_v7 }
  0x21   :  { %105 = vmatmul.bf16.vlgmr.msra.gmra.mxu0 %v188_v8  ;;  %110 = vmatmul.bf16.vlgmr.msra.gmra.mxu1 %v189_v9 }
  0x9e   :  { %v106_v10 = vpop.f32.mrf.mxu0  ;;  %v111_v11 = vpop.f32.mrf.mxu1 }
  0x9f   :  { %v120_v13 = vmul.f32 %v217_v12, %v106_v10  ;;  %v122_v15 = vmul.f32 %v217_v12, %v111_v11 }
  0xa1   :  { %v128_v18 = vadd.f32 %v218_v14, %v120_v13  ;;  %v130_v19 = vadd.f32 %v218_v14, %v122_v15 }
  0xa3   :  { %v132_v24 = vmax.f32 %v128_v18, 0.0  ;;  %v134_v25 = vmax.f32 %v130_v19, 0.0 }
  0xa6   :  { %v108_v16 = vpop.f32.mrf.mxu0  ;;  %v113_v17 = vpop.f32.mrf.mxu1 }
  0xa7   :  { %v121_v20 = vmul.f32 %v217_v12, %v108_v16  ;;  %v123_v21 = vmul.f32 %v217_v12, %v113_v17 }
  0xa9   :  { %v129_v22 = vadd.f32 %v218_v14, %v121_v20  ;;  %v131_v23 = vadd.f32 %v218_v14, %v123_v21 }
  0xab   :  { %v133_v26 = vmax.f32 %v129_v22, 0.0  ;;  %v135_v27 = vmax.f32 %v131_v23, 0.0 }
  0xad   :  { %v201_v28 = vpack.c.bf16 %v133_v26, %v132_v24  ;;  %v206_v29 = vpack.c.bf16 %v135_v27, %v134_v25 }
  0xaf   :  { %202 = vst [vmem:[%s290_s4] sm:$0xff] %v201_v28  }
  0xb0   :  { %208 = vst [vmem:[%s290_s4 + $0x8] sm:$0xff] %v206_v29  }

// kernel: backbone_forward.9
= control target key start
LH: loop header
LB: loop body
LE: loop exit
PB: predicated region body
PF: predicated region fallthrough
CT: control target
= control target key end

     0   :  { %s902_s1 = inlined_call_operand.vmem [shape: bf16[128,256], index: 1, kind: input, shape index: {}]   ;;  %s903_s5 = inlined_call_operand.vmem [shape: bf16[128,256], index: 5, kind: input, shape index: {}]   ;;  %s904_s0 = inlined_call_operand.vmem [shape: bf16[32,128], index: 0, kind: input, shape index: {}]   ;;  %s905_s4 = inlined_call_operand.vmem [shape: bf16[32,128], index: 4, kind: input, shape index: {}]   ;;  %s906_s2 = inlined_call_operand.vmem [shape: f32[1,256], index: 2, kind: input, shape index: {}]   ;;  %s907_s3 = inlined_call_operand.vmem [shape: f32[1,256], index: 3, kind: input, shape index: {}]   ;;  %s908_s6 = inlined_call_operand.vmem [shape: f32[1,256], index: 6, kind: input, shape index: {}]   ;;  %s909_s7 = inlined_call_operand.vmem [shape: f32[1,256], index: 7, kind: input, shape index: {}]   ;;  %s910_s8 = inlined_call_operand.vmem [shape: f32[32,256], index: 8, kind: output, shape index: {}]  }
   0x1   :  { %v479_v0 = vld [vmem:[%s902_s1 + $0x70] sm:$0xf]  ;;  %v574_v1 = vld [vmem:[%s902_s1 + $0x74] sm:$0xf0]  ;;  %v573_v2 = vld [vmem:[%s902_s1 + $0x74] sm:$0xf] }
   0x2   :  { %v480_v3 = vor.u32 %v574_v1, %v479_v0  ;;  %v481_v4 = vld [vmem:[%s902_s1 + $0x78] sm:$0xf0]  ;;  %v551_v5 = vld [vmem:[%s903_s5 + $0x70] sm:$0xf]  ;;  %v592_v6 = vld [vmem:[%s903_s5 + $0x74] sm:$0xf0] }
   0x3   :  { %v484_v7 = vor.u32 %v573_v2, %v481_v4  ;;  %v552_v8 = vor.u32 %v592_v6, %v551_v5  ;;  %v591_v9 = vld [vmem:[%s903_s5 + $0x74] sm:$0xf]  ;;  %v553_v10 = vld [vmem:[%s903_s5 + $0x78] sm:$0xf0]  ;;  %v471_v11 = vld [vmem:[%s902_s1 + $0x60] sm:$0xf] }
   0x4   :  { %141 = vmatpush.bf16.msra.mxu0 %v480_v3  ;;  %v556_v12 = vor.u32 %v591_v9, %v553_v10  ;;  %v572_v13 = vld [vmem:[%s902_s1 + $0x64] sm:$0xf0]  ;;  %v571_v14 = vld [vmem:[%s902_s1 + $0x64] sm:$0xf]  ;;  %v473_v15 = vld [vmem:[%s902_s1 + $0x68] sm:$0xf0] }
   0x5   :  { %160 = vmatpush.bf16.msra.mxu1 %v484_v7  ;;  %319 = vmatpush.bf16.msra.mxu2 %v552_v8  ;;  %v472_v16 = vor.u32 %v572_v13, %v471_v11  ;;  %v476_v17 = vor.u32 %v571_v14, %v473_v15  ;;  %v543_v18 = vld [vmem:[%s903_s5 + $0x60] sm:$0xf]  ;;  %v590_v19 = vld [vmem:[%s903_s5 + $0x64] sm:$0xf0]  ;;  %v589_v20 = vld [vmem:[%s903_s5 + $0x64] sm:$0xf] }
   0x6   :  { %338 = vmatpush.bf16.msra.mxu3 %v556_v12  ;;  %v544_v21 = vor.u32 %v590_v19, %v543_v18  ;;  %v545_v22 = vld [vmem:[%s903_s5 + $0x68] sm:$0xf0]  ;;  %v463_v23 = vld [vmem:[%s902_s1 + $0x50] sm:$0xf]  ;;  %v570_v24 = vld [vmem:[%s902_s1 + $0x54] sm:$0xf0] }
   0x7   :  { %v548_v25 = vor.u32 %v589_v20, %v545_v22  ;;  %v569_v26 = vld [vmem:[%s902_s1 + $0x54] sm:$0xf]  ;;  %v465_v27 = vld [vmem:[%s902_s1 + $0x58] sm:$0xf0]  ;;  %v535_v28 = vld [vmem:[%s903_s5 + $0x50] sm:$0xf]  ;;  %v464_v29 = vor.u32 %v570_v24, %v463_v23 }
   0x8   :  { %142 = vmatpush.bf16.msra.mxu0 %v472_v16  ;;  %v588_v30 = vld [vmem:[%s903_s5 + $0x54] sm:$0xf0]  ;;  %v587_v31 = vld [vmem:[%s903_s5 + $0x54] sm:$0xf]  ;;  %v537_v32 = vld [vmem:[%s903_s5 + $0x58] sm:$0xf0]  ;;  %v468_v33 = vor.u32 %v569_v26, %v465_v27 }
   0x9   :  { %161 = vmatpush.bf16.msra.mxu1 %v476_v17  ;;  %320 = vmatpush.bf16.msra.mxu2 %v544_v21  ;;  %v536_v34 = vor.u32 %v588_v30, %v535_v28  ;;  %v455_v35 = vld [vmem:[%s902_s1 + $0x40] sm:$0xf]  ;;  %v568_v36 = vld [vmem:[%s902_s1 + $0x44] sm:$0xf0]  ;;  %v567_v37 = vld [vmem:[%s902_s1 + $0x44] sm:$0xf]  ;;  %v540_v38 = vor.u32 %v587_v31, %v537_v32 }
   0xa   :  { %339 = vmatpush.bf16.msra.mxu3 %v548_v25  ;;  %v457_v39 = vld [vmem:[%s902_s1 + $0x48] sm:$0xf0]  ;;  %v527_v40 = vld [vmem:[%s903_s5 + $0x40] sm:$0xf]  ;;  %v586_v41 = vld [vmem:[%s903_s5 + $0x44] sm:$0xf0]  ;;  %v456_v44 = vor.u32 %v568_v36, %v455_v35 }
   0xb   :  { %v585_v42 = vld [vmem:[%s903_s5 + $0x44] sm:$0xf]  ;;  %v529_v43 = vld [vmem:[%s903_s5 + $0x48] sm:$0xf0]  ;;  %v460_v45 = vor.u32 %v567_v37, %v457_v39  ;;  %v528_v46 = vor.u32 %v586_v41, %v527_v40  ;;  %v447_v47 = vld [vmem:[%s902_s1 + $0x30] sm:$0xf] }
   0xc   :  { %143 = vmatpush.bf16.msra.mxu0 %v464_v29  ;;  %v566_v48 = vld [vmem:[%s902_s1 + $0x34] sm:$0xf0]  ;;  %v565_v49 = vld [vmem:[%s902_s1 + $0x34] sm:$0xf]  ;;  %v532_v50 = vor.u32 %v585_v42, %v529_v43  ;;  %v449_v51 = vld [vmem:[%s902_s1 + $0x38] sm:$0xf0] }
   0xd   :  { %162 = vmatpush.bf16.msra.mxu1 %v468_v33  ;;  %321 = vmatpush.bf16.msra.mxu2 %v536_v34  ;;  %v519_v52 = vld [vmem:[%s903_s5 + $0x30] sm:$0xf]  ;;  %v584_v53 = vld [vmem:[%s903_s5 + $0x34] sm:$0xf0]  ;;  %v583_v54 = vld [vmem:[%s903_s5 + $0x34] sm:$0xf]  ;;  %v448_v56 = vor.u32 %v566_v48, %v447_v47  ;;  %v452_v57 = vor.u32 %v565_v49, %v449_v51 }
   0xe   :  { %340 = vmatpush.bf16.msra.mxu3 %v540_v38  ;;  %v521_v55 = vld [vmem:[%s903_s5 + $0x38] sm:$0xf0]  ;;  %v520_v58 = vor.u32 %v584_v53, %v519_v52  ;;  %v439_v59 = vld [vmem:[%s902_s1 + $0x20] sm:$0xf]  ;;  %v564_v60 = vld [vmem:[%s902_s1 + $0x24] sm:$0xf0] }
   0xf   :  { %v563_v61 = vld [vmem:[%s902_s1 + $0x24] sm:$0xf]  ;;  %v524_v62 = vor.u32 %v583_v54, %v521_v55  ;;  %v441_v63 = vld [vmem:[%s902_s1 + $0x28] sm:$0xf0]  ;;  %v511_v0 = vld [vmem:[%s903_s5 + $0x20] sm:$0xf]  ;;  %v440_v4 = vor.u32 %v564_v60, %v439_v59 }
  0x10   :  { %144 = vmatpush.bf16.msra.mxu0 %v456_v44  ;;  %v582_v1 = vld [vmem:[%s903_s5 + $0x24] sm:$0xf0]  ;;  %v581_v2 = vld [vmem:[%s903_s5 + $0x24] sm:$0xf]  ;;  %v513_v3 = vld [vmem:[%s903_s5 + $0x28] sm:$0xf0]  ;;  %v444_v5 = vor.u32 %v563_v61, %v441_v63 }
  0x11   :  { %163 = vmatpush.bf16.msra.mxu1 %v460_v45  ;;  %322 = vmatpush.bf16.msra.mxu2 %v528_v46  ;;  %v512_v6 = vor.u32 %v582_v1, %v511_v0  ;;  %v431_v7 = vld [vmem:[%s902_s1 + $0x10] sm:$0xf]  ;;  %v562_v8 = vld [vmem:[%s902_s1 + $0x14] sm:$0xf0]  ;;  %v561_v9 = vld [vmem:[%s902_s1 + $0x14] sm:$0xf]  ;;  %v516_v10 = vor.u32 %v581_v2, %v513_v3 }
  0x12   :  { %341 = vmatpush.bf16.msra.mxu3 %v532_v50  ;;  %v433_v11 = vld [vmem:[%s902_s1 + $0x18] sm:$0xf0]  ;;  %v503_v12 = vld [vmem:[%s903_s5 + $0x10] sm:$0xf]  ;;  %v580_v13 = vld [vmem:[%s903_s5 + $0x14] sm:$0xf0]  ;;  %v432_v16 = vor.u32 %v562_v8, %v431_v7 }
  0x13   :  { %v579_v14 = vld [vmem:[%s903_s5 + $0x14] sm:$0xf]  ;;  %v505_v15 = vld [vmem:[%s903_s5 + $0x18] sm:$0xf0]  ;;  %v436_v17 = vor.u32 %v561_v9, %v433_v11  ;;  %v504_v18 = vor.u32 %v580_v13, %v503_v12  ;;  %v423_v19 = vld [vmem:[%s902_s1] sm:$0xf] }
  0x14   :  { %145 = vmatpush.bf16.msra.mxu0 %v448_v56  ;;  %v560_v20 = vld [vmem:[%s902_s1 + $0x4] sm:$0xf0]  ;;  %v559_v21 = vld [vmem:[%s902_s1 + $0x4] sm:$0xf]  ;;  %v508_v22 = vor.u32 %v579_v14, %v505_v15  ;;  %v425_v23 = vld [vmem:[%s902_s1 + $0x8] sm:$0xf0] }
  0x15   :  { %164 = vmatpush.bf16.msra.mxu1 %v452_v57  ;;  %323 = vmatpush.bf16.msra.mxu2 %v520_v58  ;;  %v495_v24 = vld [vmem:[%s903_s5] sm:$0xf]  ;;  %v578_v25 = vld [vmem:[%s903_s5 + $0x4] sm:$0xf0]  ;;  %v577_v26 = vld [vmem:[%s903_s5 + $0x4] sm:$0xf]  ;;  %v424_v28 = vor.u32 %v560_v20, %v423_v19  ;;  %v428_v29 = vor.u32 %v559_v21, %v425_v23 }
  0x16   :  { %342 = vmatpush.bf16.msra.mxu3 %v524_v62  ;;  %v497_v27 = vld [vmem:[%s903_s5 + $0x8] sm:$0xf0]  ;;  %v496_v30 = vor.u32 %v578_v25, %v495_v24  ;;  %v557_v32 = vld [vmem:[%s904_s0] sm:$0xff] }
  0x17   :  { %v500_v31 = vor.u32 %v577_v26, %v497_v27  ;;  %v575_v33 = vld [vmem:[%s905_s4] sm:$0xff]  ;;  %v558_v34 = vld [vmem:[%s904_s0 + $0x8] sm:$0xff] }
  0x18   :  { %146 = vmatpush.bf16.msra.mxu0 %v440_v4  ;;  %v576_v35 = vld [vmem:[%s905_s4 + $0x8] sm:$0xff]  ;;  %v179_v36 = vld [vmem:[%s906_s2] sm:$0x3] }
  0x19   :  { %165 = vmatpush.bf16.msra.mxu1 %v444_v5  ;;  %324 = vmatpush.bf16.msra.mxu2 %v512_v6  ;;  %v845_v38 = vperm.slane %v179_v36, 0  ;;  %v193_v39 = vld [vmem:[%s907_s3] sm:$0x3]  ;;  %v850_v41 = vperm.slane %v179_v36, 1 }
  0x1a   :  { %343 = vmatpush.bf16.msra.mxu3 %v516_v10  ;;  %v357_v42 = vld [vmem:[%s908_s6] sm:$0x3]  ;;  %v859_v45 = vperm.slane %v193_v39, 0  ;;  %v862_v48 = vperm.slane %v193_v39, 1 }
  0x1b   :  { %v371_v43 = vld [vmem:[%s909_s7] sm:$0x3]  ;;  %v359_v46 = vperm.slane %v357_v42, 0  ;;  %v360_v49 = vperm.slane %v357_v42, 1 }
  0x1c   :  { %147 = vmatpush.bf16.msra.mxu0 %v432_v16  ;;  %v373_v50 = vperm.slane %v371_v43, 0  ;;  %v374_v52 = vperm.slane %v371_v43, 1 }
  0x1d   :  { %166 = vmatpush.bf16.msra.mxu1 %v436_v17  ;;  %325 = vmatpush.bf16.msra.mxu2 %v504_v18 }
  0x1e   :  { %344 = vmatpush.bf16.msra.mxu3 %v508_v22 }
  0x20   :  { %148 = vmatpush.bf16.msra.mxu0 %v424_v28 }
  0x21   :  { %167 = vmatpush.bf16.msra.mxu1 %v428_v29  ;;  %326 = vmatpush.bf16.msra.mxu2 %v496_v30 }
  0x22   :  { %345 = vmatpush.bf16.msra.mxu3 %v500_v31 }
  0x23   :  { %149 = vmatmul.bf16.vlgmr.msra.gmra.mxu0 %v557_v32 }
  0x24   :  { %168 = vmatmul.bf16.vlgmr.msra.gmra.mxu1 %v557_v32  ;;  %327 = vmatmul.bf16.vlgmr.msra.gmra.mxu2 %v575_v33 }
  0x25   :  { %346 = vmatmul.bf16.vlgmr.msra.gmra.mxu3 %v575_v33 }
  0x33   :  { %154 = vmatmul.bf16.gmra.mxu0 %v558_v34 }
  0x34   :  { %173 = vmatmul.bf16.gmra.mxu1 %v558_v34  ;;  %332 = vmatmul.bf16.gmra.mxu2 %v576_v35 }
  0x35   :  { %351 = vmatmul.bf16.gmra.mxu3 %v576_v35 }
  0xa0   :  { %v150_v37 = vpop.f32.mrf.mxu0 }
  0xa1   :  { %v169_v40 = vpop.f32.mrf.mxu1  ;;  %v185_v44 = vmul.f32 %v845_v38, %v150_v37 }
  0xa2   :  { %v186_v47 = vmul.f32 %v850_v41, %v169_v40 }
  0xa3   :  { %v199_v53 = vadd.f32 %v859_v45, %v185_v44 }
  0xa4   :  { %v200_v57 = vadd.f32 %v862_v48, %v186_v47 }
  0xa7   :  { %v328_v51 = vpop.f32.mrf.mxu2 }
  0xa8   :  { %v363_v54 = vmul.f32 %v359_v46, %v328_v51  ;;  %v347_v55 = vpop.f32.mrf.mxu3  ;;  %v152_v56 = vpop.f32.mrf.mxu0 }
  0xa9   :  { %v364_v58 = vmul.f32 %v360_v49, %v347_v55  ;;  %v171_v59 = vpop.f32.mrf.mxu1  ;;  %v187_v1 = vmul.f32 %v845_v38, %v152_v56 }
  0xaa   :  { %v377_v60 = vadd.f32 %v373_v50, %v363_v54  ;;  %v188_v3 = vmul.f32 %v850_v41, %v171_v59 }
  0xab   :  { %v378_v61 = vadd.f32 %v374_v52, %v364_v58  ;;  %v201_v9 = vadd.f32 %v859_v45, %v187_v1 }
  0xac   :  { %v385_v62 = vadd.f32 %v377_v60, %v199_v53  ;;  %v202_v12 = vadd.f32 %v862_v48, %v188_v3 }
  0xad   :  { %v386_v63 = vadd.f32 %v378_v61, %v200_v57 }
  0xae   :  { %v393_v0 = vmax.f32 %v385_v62, 0.0 }
  0xaf   :  { %v394_v2 = vmax.f32 %v386_v63, 0.0  ;;  %v330_v4 = vpop.f32.mrf.mxu2 }
  0xb0   :  { %401 = vst [vmem:[%s910_s8] sm:$0xff] %v393_v0  ;;  %v365_v5 = vmul.f32 %v359_v46, %v330_v4  ;;  %v349_v6 = vpop.f32.mrf.mxu3  ;;  %v155_v8 = vpop.f32.mrf.mxu0 }
  0xb1   :  { %402 = vst [vmem:[%s910_s8 + $0x8] sm:$0xff] %v394_v2  ;;  %v366_v7 = vmul.f32 %v360_v49, %v349_v6  ;;  %v174_v11 = vpop.f32.mrf.mxu1  ;;  %v189_v15 = vmul.f32 %v845_v38, %v155_v8 }
  0xb2   :  { %v379_v10 = vadd.f32 %v373_v50, %v365_v5  ;;  %v190_v17 = vmul.f32 %v850_v41, %v174_v11 }
  0xb3   :  { %v380_v13 = vadd.f32 %v374_v52, %v366_v7  ;;  %v203_v21 = vadd.f32 %v859_v45, %v189_v15 }
  0xb4   :  { %v387_v14 = vadd.f32 %v379_v10, %v201_v9  ;;  %v204_v24 = vadd.f32 %v862_v48, %v190_v17 }
  0xb5   :  { %v388_v16 = vadd.f32 %v380_v13, %v202_v12 }
  0xb6   :  { %v395_v18 = vmax.f32 %v387_v14, 0.0 }
  0xb7   :  { %v396_v19 = vmax.f32 %v388_v16, 0.0  ;;  %v333_v20 = vpop.f32.mrf.mxu2 }
  0xb8   :  { %403 = vst [vmem:[%s910_s8 + $0x10] sm:$0xff] %v395_v18  ;;  %v367_v22 = vmul.f32 %v359_v46, %v333_v20  ;;  %v352_v23 = vpop.f32.mrf.mxu3  ;;  %v157_v28 = vpop.f32.mrf.mxu0 }
  0xb9   :  { %404 = vst [vmem:[%s910_s8 + $0x18] sm:$0xff] %v396_v19  ;;  %v368_v25 = vmul.f32 %v360_v49, %v352_v23  ;;  %v176_v30 = vpop.f32.mrf.mxu1  ;;  %v191_v33 = vmul.f32 %v845_v38, %v157_v28 }
  0xba   :  { %v381_v26 = vadd.f32 %v373_v50, %v367_v22  ;;  %v192_v35 = vmul.f32 %v850_v41, %v176_v30 }
  0xbb   :  { %v382_v27 = vadd.f32 %v374_v52, %v368_v25  ;;  %v205_v42 = vadd.f32 %v859_v45, %v191_v33 }
  0xbc   :  { %v389_v29 = vadd.f32 %v381_v26, %v203_v21  ;;  %v206_v38 = vadd.f32 %v862_v48, %v192_v35 }
  0xbd   :  { %v390_v31 = vadd.f32 %v382_v27, %v204_v24 }
  0xbe   :  { %v397_v32 = vmax.f32 %v389_v29, 0.0 }
  0xbf   :  { %v398_v34 = vmax.f32 %v390_v31, 0.0  ;;  %v335_v36 = vpop.f32.mrf.mxu2 }
  0xc0   :  { %405 = vst [vmem:[%s910_s8 + $0x20] sm:$0xff] %v397_v32  ;;  %v369_v37 = vmul.f32 %v359_v46, %v335_v36  ;;  %v354_v39 = vpop.f32.mrf.mxu3 }
  0xc1   :  { %406 = vst [vmem:[%s910_s8 + $0x28] sm:$0xff] %v398_v34  ;;  %v370_v40 = vmul.f32 %v360_v49, %v354_v39 }
  0xc2   :  { %v383_v43 = vadd.f32 %v373_v50, %v369_v37 }
  0xc3   :  { %v384_v44 = vadd.f32 %v374_v52, %v370_v40 }
  0xc4   :  { %v391_v47 = vadd.f32 %v383_v43, %v205_v42 }
  0xc5   :  { %v392_v41 = vadd.f32 %v384_v44, %v206_v38 }
  0xc6   :  { %v399_v51 = vmax.f32 %v391_v47, 0.0 }
  0xc7   :  { %v400_v53 = vmax.f32 %v392_v41, 0.0 }
  0xc8   :  { %407 = vst [vmem:[%s910_s8 + $0x30] sm:$0xff] %v399_v51 }
  0xc9   :  { %408 = vst [vmem:[%s910_s8 + $0x38] sm:$0xff] %v400_v53 }

// kernel: backbone_forward.8
= control target key start
LH: loop header
LB: loop body
LE: loop exit
PB: predicated region body
PF: predicated region fallthrough
CT: control target
= control target key end

     0   :  { %s1016_s1 = inlined_call_operand.vmem [shape: bf16[640,128], index: 1, kind: input, shape index: {}]   ;;  %s1017_s0 = inlined_call_operand.vmem [shape: bf16[32,640], index: 0, kind: input, shape index: {}]   ;;  %s1018_s2 = inlined_call_operand.vmem [shape: f32[1,128], index: 2, kind: input, shape index: {}]   ;;  %s1019_s3 = inlined_call_operand.vmem [shape: f32[1,128], index: 3, kind: input, shape index: {}]   ;;  %s1020_s4 = inlined_call_operand.vmem [shape: bf16[32,128], index: 4, kind: output, shape index: {}]  }
   0x1   :  { %v745_v0 = vld [vmem:[%s1016_s1 + $0x38] sm:$0xff]  ;;  %v744_v4 = vld [vmem:[%s1016_s1 + $0x30] sm:$0xff]  ;;  %v743_v8 = vld [vmem:[%s1016_s1 + $0x28] sm:$0xff] }
   0x2   :  { %v753_v1 = vld [vmem:[%s1016_s1 + $0x78] sm:$0xff]  ;;  %401 = vmatpush.bf16.msra.mxu0 %v745_v0  ;;  %v752_v5 = vld [vmem:[%s1016_s1 + $0x70] sm:$0xff]  ;;  %v751_v9 = vld [vmem:[%s1016_s1 + $0x68] sm:$0xff] }
   0x3   :  { %v761_v2 = vld [vmem:[%s1016_s1 + $0xb8] sm:$0xff]  ;;  %420 = vmatpush.bf16.msra.mxu1 %v753_v1  ;;  %v760_v6 = vld [vmem:[%s1016_s1 + $0xb0] sm:$0xff]  ;;  %v759_v10 = vld [vmem:[%s1016_s1 + $0xa8] sm:$0xff] }
   0x4   :  { %v769_v3 = vld [vmem:[%s1016_s1 + $0xf8] sm:$0xff]  ;;  %439 = vmatpush.bf16.msra.mxu2 %v761_v2  ;;  %v768_v7 = vld [vmem:[%s1016_s1 + $0xf0] sm:$0xff]  ;;  %v767_v11 = vld [vmem:[%s1016_s1 + $0xe8] sm:$0xff] }
   0x5   :  { %458 = vmatpush.bf16.msra.mxu3 %v769_v3  ;;  %v742_v12 = vld [vmem:[%s1016_s1 + $0x20] sm:$0xff]  ;;  %v741_v16 = vld [vmem:[%s1016_s1 + $0x18] sm:$0xff]  ;;  %v740_v20 = vld [vmem:[%s1016_s1 + $0x10] sm:$0xff] }
   0x6   :  { %402 = vmatpush.bf16.msra.mxu0 %v744_v4  ;;  %v750_v13 = vld [vmem:[%s1016_s1 + $0x60] sm:$0xff]  ;;  %v749_v17 = vld [vmem:[%s1016_s1 + $0x58] sm:$0xff]  ;;  %v748_v21 = vld [vmem:[%s1016_s1 + $0x50] sm:$0xff] }
   0x7   :  { %421 = vmatpush.bf16.msra.mxu1 %v752_v5  ;;  %v758_v14 = vld [vmem:[%s1016_s1 + $0xa0] sm:$0xff]  ;;  %v757_v18 = vld [vmem:[%s1016_s1 + $0x98] sm:$0xff]  ;;  %v756_v22 = vld [vmem:[%s1016_s1 + $0x90] sm:$0xff] }
   0x8   :  { %440 = vmatpush.bf16.msra.mxu2 %v760_v6  ;;  %v766_v15 = vld [vmem:[%s1016_s1 + $0xe0] sm:$0xff]  ;;  %v765_v19 = vld [vmem:[%s1016_s1 + $0xd8] sm:$0xff]  ;;  %v764_v23 = vld [vmem:[%s1016_s1 + $0xd0] sm:$0xff] }
   0x9   :  { %459 = vmatpush.bf16.msra.mxu3 %v768_v7  ;;  %v739_v24 = vld [vmem:[%s1016_s1 + $0x8] sm:$0xff]  ;;  %v738_v28 = vld [vmem:[%s1016_s1] sm:$0xff]  ;;  %v730_v33 = vld [vmem:[%s1017_s0 + $0x10] sm:$0xf0] }
   0xa   :  { %403 = vmatpush.bf16.msra.mxu0 %v743_v8  ;;  %v747_v25 = vld [vmem:[%s1016_s1 + $0x48] sm:$0xff]  ;;  %v746_v29 = vld [vmem:[%s1016_s1 + $0x40] sm:$0xff]  ;;  %v532_v35 = vld [vmem:[%s1017_s0 + $0x14] sm:$0xf0] }
   0xb   :  { %422 = vmatpush.bf16.msra.mxu1 %v751_v9  ;;  %v755_v26 = vld [vmem:[%s1016_s1 + $0x88] sm:$0xff]  ;;  %v754_v30 = vld [vmem:[%s1016_s1 + $0x80] sm:$0xff]  ;;  %v731_v37 = vld [vmem:[%s1017_s0 + $0x18] sm:$0xf0] }
   0xc   :  { %441 = vmatpush.bf16.msra.mxu2 %v759_v10  ;;  %v763_v27 = vld [vmem:[%s1016_s1 + $0xc8] sm:$0xff]  ;;  %v762_v31 = vld [vmem:[%s1016_s1 + $0xc0] sm:$0xff]  ;;  %v777_v40 = vld [vmem:[%s1016_s1 + $0x138] sm:$0xff] }
   0xd   :  { %460 = vmatpush.bf16.msra.mxu3 %v767_v11  ;;  %v530_v32 = vld [vmem:[%s1017_s0] sm:$0xf]  ;;  %v728_v34 = vld [vmem:[%s1017_s0 + $0x4] sm:$0xf]  ;;  %v538_v36 = vld [vmem:[%s1017_s0 + $0x8] sm:$0xf] }
   0xe   :  { %404 = vmatpush.bf16.msra.mxu0 %v742_v12  ;;  %v729_v38 = vld [vmem:[%s1017_s0 + $0xc] sm:$0xf]  ;;  %v540_v39 = vld [vmem:[%s1017_s0 + $0x1c] sm:$0xf0]  ;;  %v531_v41 = vor.u32 %v730_v33, %v530_v32  ;;  %v535_v42 = vor.u32 %v728_v34, %v532_v35  ;;  %v539_v43 = vor.u32 %v731_v37, %v538_v36  ;;  %v776_v45 = vld [vmem:[%s1016_s1 + $0x130] sm:$0xff] }
   0xf   :  { %423 = vmatpush.bf16.msra.mxu1 %v750_v13  ;;  %v543_v44 = vor.u32 %v729_v38, %v540_v39  ;;  %v775_v46 = vld [vmem:[%s1016_s1 + $0x128] sm:$0xff]  ;;  %v774_v47 = vld [vmem:[%s1016_s1 + $0x120] sm:$0xff]  ;;  %v735_v49 = vld [vmem:[%s1017_s0 + $0x38] sm:$0xf0] }
  0x10   :  { %442 = vmatpush.bf16.msra.mxu2 %v758_v14  ;;  %v550_v48 = vld [vmem:[%s1017_s0 + $0x28] sm:$0xf]  ;;  %v733_v50 = vld [vmem:[%s1017_s0 + $0x2c] sm:$0xf]  ;;  %v552_v51 = vld [vmem:[%s1017_s0 + $0x3c] sm:$0xf0] }
  0x11   :  { %461 = vmatpush.bf16.msra.mxu3 %v766_v15  ;;  %v558_v52 = vld [vmem:[%s1017_s0 + $0x30] sm:$0xf]  ;;  %v736_v53 = vld [vmem:[%s1017_s0 + $0x40] sm:$0xf0]  ;;  %v734_v54 = vld [vmem:[%s1017_s0 + $0x34] sm:$0xf]  ;;  %v551_v57 = vor.u32 %v735_v49, %v550_v48  ;;  %v555_v58 = vor.u32 %v733_v50, %v552_v51 }
  0x12   :  { %405 = vmatpush.bf16.msra.mxu0 %v741_v16  ;;  %v560_v55 = vld [vmem:[%s1017_s0 + $0x44] sm:$0xf0]  ;;  %v773_v56 = vld [vmem:[%s1016_s1 + $0x118] sm:$0xff]  ;;  %v559_v59 = vor.u32 %v736_v53, %v558_v52  ;;  %v772_v61 = vld [vmem:[%s1016_s1 + $0x110] sm:$0xff] }
  0x13   :  { %424 = vmatpush.bf16.msra.mxu1 %v749_v17  ;;  %v563_v60 = vor.u32 %v734_v54, %v560_v55  ;;  %v771_v62 = vld [vmem:[%s1016_s1 + $0x108] sm:$0xff]  ;;  %v770_v63 = vld [vmem:[%s1016_s1 + $0x100] sm:$0xff]  ;;  %v546_v0 = vld [vmem:[%s1017_s0 + $0x10] sm:$0xf] }
  0x14   :  { %443 = vmatpush.bf16.msra.mxu2 %v757_v18  ;;  %v732_v1 = vld [vmem:[%s1017_s0 + $0x20] sm:$0xf0]  ;;  %v566_v2 = vld [vmem:[%s1017_s0 + $0x38] sm:$0xf]  ;;  %v737_v3 = vld [vmem:[%s1017_s0 + $0x48] sm:$0xf0] }
  0x15   :  { %462 = vmatpush.bf16.msra.mxu3 %v765_v19  ;;  %v547_v4 = vor.u32 %v732_v1, %v546_v0  ;;  %v567_v5 = vor.u32 %v737_v3, %v566_v2  ;;  %v797_v34 = vld [vmem:[%s1018_s2] ss:$0 sm:$0xff] }
  0x16   :  { %406 = vmatpush.bf16.msra.mxu0 %v740_v20 }
  0x17   :  { %425 = vmatpush.bf16.msra.mxu1 %v748_v21 }
  0x18   :  { %444 = vmatpush.bf16.msra.mxu2 %v756_v22 }
  0x19   :  { %463 = vmatpush.bf16.msra.mxu3 %v764_v23 }
  0x1a   :  { %407 = vmatpush.bf16.msra.mxu0 %v739_v24 }
  0x1b   :  { %426 = vmatpush.bf16.msra.mxu1 %v747_v25 }
  0x1c   :  { %445 = vmatpush.bf16.msra.mxu2 %v755_v26 }
  0x1d   :  { %464 = vmatpush.bf16.msra.mxu3 %v763_v27 }
  0x1e   :  { %408 = vmatpush.bf16.msra.mxu0 %v738_v28 }
  0x1f   :  { %427 = vmatpush.bf16.msra.mxu1 %v746_v29 }
  0x20   :  { %446 = vmatpush.bf16.msra.mxu2 %v754_v30 }
  0x21   :  { %465 = vmatpush.bf16.msra.mxu3 %v762_v31  ;;  %409 = vmatmul.bf16.vlgmr.msra.gmra.mxu0 %v531_v41 }
  0x22   :  { %477 = vmatpush.bf16.msrb.mxu0 %v777_v40  ;;  %428 = vmatmul.bf16.vlgmr.msra.gmra.mxu1 %v535_v42 }
  0x23   :  { %789 = vmatpush.bf16.msrb.mxu1 %v777_v40  ;;  %447 = vmatmul.bf16.vlgmr.msra.gmra.mxu2 %v539_v43  ;;  %v798_v40 = vld [vmem:[%s1019_s3] ss:$0 sm:$0xff] }
  0x24   :  { %466 = vmatmul.bf16.vlgmr.msra.gmra.mxu3 %v543_v44 }
  0x26   :  { %478 = vmatpush.bf16.msrb.mxu0 %v776_v45 }
  0x27   :  { %790 = vmatpush.bf16.msrb.mxu1 %v776_v45 }
  0x2a   :  { %479 = vmatpush.bf16.msrb.mxu0 %v775_v46 }
  0x2b   :  { %791 = vmatpush.bf16.msrb.mxu1 %v775_v46 }
  0x2e   :  { %480 = vmatpush.bf16.msrb.mxu0 %v774_v47 }
  0x2f   :  { %792 = vmatpush.bf16.msrb.mxu1 %v774_v47 }
  0x31   :  { %414 = vmatmul.bf16.gmra.mxu0 %v551_v57 }
  0x32   :  { %481 = vmatpush.bf16.msrb.mxu0 %v773_v56  ;;  %433 = vmatmul.bf16.gmra.mxu1 %v555_v58 }
  0x33   :  { %793 = vmatpush.bf16.msrb.mxu1 %v773_v56  ;;  %452 = vmatmul.bf16.gmra.mxu2 %v559_v59 }
  0x34   :  { %471 = vmatmul.bf16.gmra.mxu3 %v563_v60 }
  0x36   :  { %482 = vmatpush.bf16.msrb.mxu0 %v772_v61 }
  0x37   :  { %794 = vmatpush.bf16.msrb.mxu1 %v772_v61 }
  0x3a   :  { %483 = vmatpush.bf16.msrb.mxu0 %v771_v62 }
  0x3b   :  { %795 = vmatpush.bf16.msrb.mxu1 %v771_v62 }
  0x3e   :  { %484 = vmatpush.bf16.msrb.mxu0 %v770_v63 }
  0x3f   :  { %796 = vmatpush.bf16.msrb.mxu1 %v770_v63 }
  0x41   :  { %485 = vmatmul.bf16.vlgmr.msrb.gmra.mxu0 %v547_v4 }
  0x42   :  { %490 = vmatmul.bf16.vlgmr.msrb.gmra.mxu1 %v567_v5 }
  0x9e   :  { %v410_v6 = vpop.f32.mrf.mxu0 }
  0x9f   :  { %v429_v7 = vpop.f32.mrf.mxu1 }
  0xa0   :  { %v430_v19 = vadd.f32 %v429_v7, %v410_v6 }
  0xa6   :  { %v448_v8 = vpop.f32.mrf.mxu2  ;;  %v412_v10 = vpop.f32.mrf.mxu0 }
  0xa7   :  { %v467_v9 = vpop.f32.mrf.mxu3  ;;  %v431_v11 = vpop.f32.mrf.mxu1  ;;  %v449_v22 = vadd.f32 %v448_v8, %v430_v19 }
  0xa8   :  { %v432_v28 = vadd.f32 %v431_v11, %v412_v10 }
  0xa9   :  { %v468_v27 = vadd.f32 %v467_v9, %v449_v22 }
  0xae   :  { %v450_v12 = vpop.f32.mrf.mxu2  ;;  %v415_v13 = vpop.f32.mrf.mxu0 }
  0xaf   :  { %v434_v14 = vpop.f32.mrf.mxu1  ;;  %v469_v15 = vpop.f32.mrf.mxu3  ;;  %v451_v31 = vadd.f32 %v450_v12, %v432_v28 }
  0xb0   :  { %v435_v20 = vadd.f32 %v434_v14, %v415_v13 }
  0xb1   :  { %v470_v37 = vadd.f32 %v469_v15, %v451_v31 }
  0xb6   :  { %v453_v16 = vpop.f32.mrf.mxu2  ;;  %v417_v17 = vpop.f32.mrf.mxu0 }
  0xb7   :  { %v436_v18 = vpop.f32.mrf.mxu1  ;;  %v472_v21 = vpop.f32.mrf.mxu3  ;;  %v454_v23 = vadd.f32 %v453_v16, %v435_v20 }
  0xb8   :  { %v437_v30 = vadd.f32 %v436_v18, %v417_v17 }
  0xb9   :  { %v473_v29 = vadd.f32 %v472_v21, %v454_v23 }
  0xbe   :  { %v455_v24 = vpop.f32.mrf.mxu2  ;;  %v486_v25 = vpop.f32.mrf.mxu0 }
  0xbf   :  { %v491_v26 = vpop.f32.mrf.mxu1  ;;  %v456_v32 = vadd.f32 %v455_v24, %v437_v30  ;;  %v487_v33 = vadd.f32 %v486_v25, %v468_v27  ;;  %v474_v36 = vpop.f32.mrf.mxu3 }
  0xc0   :  { %v492_v35 = vadd.f32 %v491_v26, %v473_v29 }
  0xc1   :  { %v475_v38 = vadd.f32 %v474_v36, %v456_v32  ;;  %v500_v39 = vmul.f32 %v797_v34, %v487_v33 }
  0xc2   :  { %v502_v41 = vmul.f32 %v797_v34, %v492_v35 }
  0xc3   :  { %v508_v46 = vadd.f32 %v798_v40, %v500_v39 }
  0xc4   :  { %v510_v47 = vadd.f32 %v798_v40, %v502_v41 }
  0xc5   :  { %v512_v52 = vmax.f32 %v508_v46, 0.0 }
  0xc6   :  { %v488_v42 = vpop.f32.mrf.mxu0  ;;  %v514_v53 = vmax.f32 %v510_v47, 0.0 }
  0xc7   :  { %v493_v43 = vpop.f32.mrf.mxu1  ;;  %v489_v44 = vadd.f32 %v488_v42, %v470_v37 }
  0xc8   :  { %v494_v45 = vadd.f32 %v493_v43, %v475_v38 }
  0xc9   :  { %v501_v48 = vmul.f32 %v797_v34, %v489_v44 }
  0xca   :  { %v503_v49 = vmul.f32 %v797_v34, %v494_v45 }
  0xcb   :  { %v509_v50 = vadd.f32 %v798_v40, %v501_v48 }
  0xcc   :  { %v511_v51 = vadd.f32 %v798_v40, %v503_v49 }
  0xcd   :  { %v513_v54 = vmax.f32 %v509_v50, 0.0 }
  0xce   :  { %v515_v55 = vmax.f32 %v511_v51, 0.0 }
  0xcf   :  { %v781_v56 = vpack.c.bf16 %v513_v54, %v512_v52 }
  0xd0   :  { %v786_v57 = vpack.c.bf16 %v515_v55, %v514_v53 }
  0xd1   :  { %782 = vst [vmem:[%s1020_s4] sm:$0xff] %v781_v56  }
  0xd2   :  { %788 = vst [vmem:[%s1020_s4 + $0x8] sm:$0xff] %v786_v57  }

</bundles_post_ra>
